<compile_context>
chip_gen: v6e
topology: v6e:2x2x1
jax: 0.10.0
libtpu: 0.0.40
codegen_flags: <defaults>
</compile_context>

<pallas_src>
import functools

import jax
import jax.numpy as jnp
from jax import lax
from jax.experimental import pallas as pl
from jax.experimental.pallas import tpu as pltpu

# --- hyper-parameters from the PyTorch module -------------------------------
D_MODEL = 200
NUM_HEADS = 20
NUM_GROUPS = 2
HEAD_DIM = D_MODEL // NUM_HEADS            # 10
KV_DIM = NUM_GROUPS * HEAD_DIM             # 20
DIM_FF = 400
SCALE = HEAD_DIM ** (-0.5)
EPS = 1e-5


# --- kernel 1: q/kv projections + grouped-query attention (row-wise) --------
def _attn_kernel(x_ref, wq_ref, wkv_ref, sel_ref, pool_ref, out_ref, kv_ref):
    # bf16 operands on the MXU, f32 accumulation.
    x = x_ref[...].astype(jnp.bfloat16)                                # (rows, D)
    # q is pre-scaled (softmax scale folded into wq at param-prep time).
    q = jnp.dot(x, wq_ref[...], preferred_element_type=jnp.float32)    # (rows, D) f32
    kv = jnp.dot(x, wkv_ref[...], preferred_element_type=jnp.float32)  # (rows, 40) f32
    kv_ref[...] = kv                                                   # kv-cache output

    pool = pool_ref[...]        # (D, H): pool[h*hd+d, h] = 1 (per-head lane sum)

    scores, vtiles = [], []
    for g in range(NUM_GROUPS):
        # Per-group k/v tiled over heads straight from the 40-lane kv result via a
        # tiny resident (40, D) selector matmul -- no 10-lane in-kernel slices and
        # no D-deep folded-weight matmuls.
        k_tile = jnp.dot(kv, sel_ref[g], preferred_element_type=jnp.float32)
        vtiles.append(jnp.dot(kv, sel_ref[NUM_GROUPS + g],
                              preferred_element_type=jnp.float32))
        # scores_g[r, h] = scale * sum_d q[r,h,d] * k[r,g,d]
        scores.append(jnp.dot(q * k_tile, pool, preferred_element_type=jnp.float32))

    # softmax over the group axis (f32, reciprocal on the EUP)
    m = functools.reduce(jnp.maximum, scores)
    exps = [jnp.exp(s - m) for s in scores]
    inv_denom = pl.reciprocal(functools.reduce(jnp.add, exps), approx=True)

    # out[r, h*hd+d] = sum_g softmax[r,h,g] * v[r,g,d]   (natural (H, hd) lane order)
    out = jnp.zeros_like(q)
    for g in range(NUM_GROUPS):
        w_b = lax.dot_general(exps[g] * inv_denom, pool,
                              (((1,), (1,)), ((), ())),
                              preferred_element_type=jnp.float32)      # (rows, D)
        out = out + w_b * vtiles[g]
    out_ref[...] = out


# --- kernel 2: out_proj + residual + norm1 + FFN + residual + norm2 ----------
def _ffn_kernel(a_ref, x_ref, wo_ref, w1_ref, b1_ref, w2_ref, b2_ref,
                g1_ref, be1_ref, g2_ref, be2_ref, o_ref):
    a = a_ref[...].astype(jnp.bfloat16)                                # (rows, D) scrambled attn
    attn_out = jnp.dot(a, wo_ref[...], preferred_element_type=jnp.float32)
    h = attn_out + x_ref[...]                                          # residual (f32)
    mu = jnp.mean(h, axis=-1, keepdims=True)
    var = jnp.mean((h - mu) ** 2, axis=-1, keepdims=True)
    y = (h - mu) * lax.rsqrt(var + EPS) * g1_ref[...] + be1_ref[...]

    ff = jnp.maximum(
        jnp.dot(y.astype(jnp.bfloat16), w1_ref[...],
                preferred_element_type=jnp.float32) + b1_ref[...],
        0.0)
    ff2 = jnp.dot(ff.astype(jnp.bfloat16), w2_ref[...],
                  preferred_element_type=jnp.float32) + b2_ref[...]
    h2 = ff2 + y
    mu2 = jnp.mean(h2, axis=-1, keepdims=True)
    var2 = jnp.mean((h2 - mu2) ** 2, axis=-1, keepdims=True)
    o_ref[...] = (h2 - mu2) * lax.rsqrt(var2 + EPS) * g2_ref[...] + be2_ref[...]


# --- wrappers ----------------------------------------------------------------
def _resident_spec(shape):
    # weights: same block every grid step -> stay VMEM-resident across steps
    nd = len(shape)
    return pl.BlockSpec(shape, lambda i, _n=nd: (0,) * _n)


def _pick_row_block(R):
    # <=256-row blocks (HBM-roofline sweet spot), multiple of 8, and chosen so the
    # grid has >= 2 steps whenever R allows (v7x dual-TensorCore via "parallel").
    rb = min(256, max(1, (R + 1) // 2))
    rb = 8 * ((rb + 7) // 8)
    return max(8, rb)


def gqa_core(x2p, wq_b, wkv_b, sel_stack, pool, rb):
    Rp, D = x2p.shape
    return pl.pallas_call(
        _attn_kernel,
        grid=(Rp // rb,),
        in_specs=[
            pl.BlockSpec((rb, D), lambda i: (i, 0)),
            _resident_spec(wq_b.shape),
            _resident_spec(wkv_b.shape),
            _resident_spec(sel_stack.shape),
            _resident_spec(pool.shape),
        ],
        out_specs=[
            pl.BlockSpec((rb, D), lambda i: (i, 0)),
            pl.BlockSpec((rb, 2 * KV_DIM), lambda i: (i, 0)),
        ],
        out_shape=(
            jax.ShapeDtypeStruct((Rp, D), jnp.float32),
            jax.ShapeDtypeStruct((Rp, 2 * KV_DIM), jnp.float32),
        ),
        # independent row blocks -> shardable over v7x's 2 TensorCores
        compiler_params=pltpu.CompilerParams(dimension_semantics=("parallel",)),
    )(x2p, wq_b, wkv_b, sel_stack, pool)


def ffn_core(a2p, x2p, wo_b, w1_b, b1, w2_b, b2, g1, be1, g2, be2, rb):
    Rp, D = x2p.shape
    return pl.pallas_call(
        _ffn_kernel,
        grid=(Rp // rb,),
        in_specs=[
            pl.BlockSpec((rb, D), lambda i: (i, 0)),
            pl.BlockSpec((rb, D), lambda i: (i, 0)),
            _resident_spec(wo_b.shape),
            _resident_spec(w1_b.shape),
            _resident_spec(b1.shape),
            _resident_spec(w2_b.shape),
            _resident_spec(b2.shape),
            _resident_spec(g1.shape),
            _resident_spec(be1.shape),
            _resident_spec(g2.shape),
            _resident_spec(be2.shape),
        ],
        out_specs=pl.BlockSpec((rb, D), lambda i: (i, 0)),
        out_shape=jax.ShapeDtypeStruct((Rp, D), jnp.float32),
        compiler_params=pltpu.CompilerParams(dimension_semantics=("parallel",)),
    )(a2p, x2p, wo_b, w1_b, b1, w2_b, b2, g1, be1, g2, be2)


def prepare_params(params):
    """One-time parameter prep (done OUTSIDE the jitted forward): fold the softmax
    scale into wq, cast matmul weights to bf16, and build constant selectors."""
    (wq_t, wk_t, wv_t, wo_t, w1_t, b1, w2_t, b2, g1, be1, g2, be2) = params

    wq_b = (wq_t * SCALE).astype(jnp.bfloat16)                            # (D, D)
    wkv_b = jnp.concatenate([wk_t, wv_t], axis=1).astype(jnp.bfloat16)    # (D, 40)

    lane = jnp.arange(D_MODEL)
    heads = jnp.arange(NUM_HEADS)
    c40 = jnp.arange(2 * KV_DIM)
    # pool[h*hd+d, h] = 1  -> per-head lane reduction / per-head broadcast
    pool = (lane[:, None] // HEAD_DIM == heads[None, :]).astype(jnp.float32)

    # sel(off)[off + (c % hd), c] = 1 -> tiles kv[:, off:off+hd] across all heads
    def sel(off):
        return (c40[:, None] == off + (lane[None, :] % HEAD_DIM)).astype(jnp.float32)

    sel_stack = jnp.stack(
        [sel(g * HEAD_DIM) for g in range(NUM_GROUPS)] +            # k groups
        [sel(KV_DIM + g * HEAD_DIM) for g in range(NUM_GROUPS)])    # v groups

    return (wq_b, wkv_b, sel_stack, pool,
            wo_t.astype(jnp.bfloat16),
            w1_t.astype(jnp.bfloat16), b1,
            w2_t.astype(jnp.bfloat16), b2,
            g1, be1, g2, be2)


@jax.jit
def decoder_layer_forward(x, prep):
    (wq_b, wkv_b, sel_stack, pool,
     wo_b, w1_b, b1, w2_b, b2, g1, be1, g2, be2) = prep
    B, S, D = x.shape
    R = B * S
    rb = _pick_row_block(R)
    Rp = ((R + rb - 1) // rb) * rb

    x2 = x.reshape(R, D)
    x2p = jnp.pad(x2, ((0, Rp - R), (0, 0))) if Rp != R else x2

    out2p, kv2p = gqa_core(x2p, wq_b, wkv_b, sel_stack, pool, rb)
    out2, kv2 = out2p[:R], kv2p[:R]

    # Reproduce torch's `.transpose(1, 2).contiguous().view(B, S, D)` exactly.
    # This interleaves heads/tokens at 10-lane granularity (a lane<->sublane
    # shuffle), so it stays a tiny XLA relayout between the two kernels.
    attn_scr2 = (out2.reshape(B, S, NUM_HEADS, HEAD_DIM)
                     .transpose(0, 2, 1, 3).reshape(R, D))
    attn_scr2p = (jnp.pad(attn_scr2, ((0, Rp - R), (0, 0)))
                  if Rp != R else attn_scr2)

    y2p = ffn_core(attn_scr2p, x2p, wo_b, w1_b, b1, w2_b, b2, g1, be1, g2, be2, rb)
    y2 = y2p[:R]

    kv = kv2.reshape(B, S, 2 * KV_DIM)
    k_cache = kv[..., :KV_DIM].reshape(B, S, NUM_GROUPS, HEAD_DIM)
    v_cache = kv[..., KV_DIM:].reshape(B, S, NUM_GROUPS, HEAD_DIM)
    return y2.reshape(B, S, D), (k_cache, v_cache)


# --- pure-JAX reference (mirrors the PyTorch forward, eval mode, f32) --------
def _layernorm(h, g, b):
    mu = jnp.mean(h, axis=-1, keepdims=True)
    var = jnp.mean((h - mu) ** 2, axis=-1, keepdims=True)
    return (h - mu) / jnp.sqrt(var + EPS) * g + b


def reference_forward(x, params):
    (wq_t, wk_t, wv_t, wo_t, w1_t, b1, w2_t, b2, g1, be1, g2, be2) = params
    B, S, D = x.shape
    q = (x @ wq_t).reshape(B, S, NUM_HEADS, HEAD_DIM)
    k = (x @ wk_t).reshape(B, S, NUM_GROUPS, HEAD_DIM)
    v = (x @ wv_t).reshape(B, S, NUM_GROUPS, HEAD_DIM)
    aw = jnp.einsum('bshd,bsgd->bshg', q, k) * SCALE
    aw = jax.nn.softmax(aw, axis=-1)
    out = jnp.einsum('bshg,bsgd->bshd', aw, v)
    out = out.transpose(0, 2, 1, 3).reshape(B, S, D)
    attn_output = out @ wo_t
    h = _layernorm(attn_output + x, g1, be1)
    ff = jax.nn.relu(h @ w1_t + b1) @ w2_t + b2
    h2 = _layernorm(ff + h, g2, be2)
    return h2, (k, v)


# --- main --------------------------------------------------------------------
if __name__ == "__main__":
    B, S = 2, 8
    key = jax.random.PRNGKey(0)
    ks = jax.random.split(key, 13)

    def init(k, shape, scale=0.05):
        return scale * jax.random.normal(k, shape, jnp.float32)

    x = jax.random.normal(ks[0], (B, S, D_MODEL), jnp.float32)
    params = (
        init(ks[1], (D_MODEL, D_MODEL)),          # q_proj  (W^T)
        init(ks[2], (D_MODEL, KV_DIM)),           # kv_proj k-half (W^T)
        init(ks[3], (D_MODEL, KV_DIM)),           # kv_proj v-half (W^T)
        init(ks[4], (D_MODEL, D_MODEL)),          # out_proj (W^T)
        init(ks[5], (D_MODEL, DIM_FF)),           # linear1 (W^T)
        init(ks[6], (1, DIM_FF)),                 # linear1 bias
        init(ks[7], (DIM_FF, D_MODEL)),           # linear2 (W^T)
        init(ks[8], (1, D_MODEL)),                # linear2 bias
        1.0 + init(ks[9], (1, D_MODEL)),          # norm1 gamma
        init(ks[10], (1, D_MODEL)),               # norm1 beta
        1.0 + init(ks[11], (1, D_MODEL)),         # norm2 gamma
        init(ks[12], (1, D_MODEL)),               # norm2 beta
    )

    prep = prepare_params(params)
    y, (k_cache, v_cache) = decoder_layer_forward(x, prep)
    jax.block_until_ready((y, k_cache, v_cache))

    y_ref, (k_ref, v_ref) = reference_forward(x, params)
    # Tolerances account for bf16 matmul operands (f32 accumulation) through a
    # chain of 5 matmuls plus the approximate (EUP) softmax reciprocal; a real
    # bug (wrong weights / wrong head interleave) produces O(1) errors.
    assert jnp.allclose(y, y_ref, atol=5e-2, rtol=5e-2), "output mismatch"
    assert jnp.allclose(k_cache, k_ref, atol=2e-2, rtol=2e-2), "k cache mismatch"
    assert jnp.allclose(v_cache, v_ref, atol=2e-2, rtol=2e-2), "v cache mismatch"

    print("KERNEL_OK")
</pallas_src>

<mosaic_0001>
module attributes {stable_mosaic.version = 11 : i64} {
  func.func @_attn_kernel(%arg0: i32, %arg1: memref<8x200xf32, #tpu.memory_space<vmem>>, %arg2: memref<200x200xbf16, #tpu.memory_space<vmem>>, %arg3: memref<200x40xbf16, #tpu.memory_space<vmem>>, %arg4: memref<4x40x200xf32, #tpu.memory_space<vmem>>, %arg5: memref<200x20xf32, #tpu.memory_space<vmem>>, %arg6: memref<8x200xf32, #tpu.memory_space<vmem>>, %arg7: memref<8x40xf32, #tpu.memory_space<vmem>>) attributes {dimension_semantics = [#tpu.dimension_semantics<parallel>], iteration_bounds = array<i64: 2>, scalar_prefetch = 0 : i64, scratch_operands = 0 : i64, tpu.core_type = #tpu.core_type<tc>, window_params = [{transform_indices = @transform_0, window_bounds = array<i64: 8, 200>}, {pipeline_mode = #tpu.pipeline_mode<synchronous>, transform_indices = @transform_1, window_bounds = array<i64: 200, 200>}, {pipeline_mode = #tpu.pipeline_mode<synchronous>, transform_indices = @transform_2, window_bounds = array<i64: 200, 40>}, {pipeline_mode = #tpu.pipeline_mode<synchronous>, transform_indices = @transform_3, window_bounds = array<i64: 4, 40, 200>}, {pipeline_mode = #tpu.pipeline_mode<synchronous>, transform_indices = @transform_4, window_bounds = array<i64: 200, 20>}, {transform_indices = @transform_5, window_bounds = array<i64: 8, 200>}, {transform_indices = @transform_6, window_bounds = array<i64: 8, 40>}]} {
    %c0 = arith.constant 0 : index
    %c0_0 = arith.constant 0 : index
    %0 = vector.load %arg1[%c0, %c0_0] : memref<8x200xf32, #tpu.memory_space<vmem>>, vector<8x200xf32>
    %1 = arith.truncf %0 : vector<8x200xf32> to vector<8x200xbf16>
    %c0_1 = arith.constant 0 : index
    %c0_2 = arith.constant 0 : index
    %2 = vector.load %arg2[%c0_1, %c0_2] : memref<200x200xbf16, #tpu.memory_space<vmem>>, vector<200x200xbf16>
    %cst = arith.constant dense<0.000000e+00> : vector<8x200xf32>
    %3 = tpu.matmul %1, %2, %cst {dimension_numbers = #tpu.dot_dimension_numbers<[1], [0], [0], [1], [0, 0, 1, 1], [], []>} : vector<8x200xbf16>, vector<200x200xbf16>, vector<8x200xf32> -> vector<8x200xf32>
    %c0_3 = arith.constant 0 : index
    %c0_4 = arith.constant 0 : index
    %4 = vector.load %arg3[%c0_3, %c0_4] : memref<200x40xbf16, #tpu.memory_space<vmem>>, vector<200x40xbf16>
    %cst_5 = arith.constant dense<0.000000e+00> : vector<8x40xf32>
    %5 = tpu.matmul %1, %4, %cst_5 {dimension_numbers = #tpu.dot_dimension_numbers<[1], [0], [0], [1], [0, 0, 1, 1], [], []>} : vector<8x200xbf16>, vector<200x40xbf16>, vector<8x40xf32> -> vector<8x40xf32>
    %c0_6 = arith.constant 0 : index
    %c0_7 = arith.constant 0 : index
    %6 = vector.load %arg7[%c0_6, %c0_7] : memref<8x40xf32, #tpu.memory_space<vmem>>, vector<8x40xf32>
    tpu.vector_store %arg7[%c0_6, %c0_7], %5 {strides = array<i32>} : memref<8x40xf32, #tpu.memory_space<vmem>>, vector<8x40xf32>,
    %c0_8 = arith.constant 0 : index
    %c0_9 = arith.constant 0 : index
    %7 = vector.load %arg5[%c0_8, %c0_9] : memref<200x20xf32, #tpu.memory_space<vmem>>, vector<200x20xf32>
    %c0_10 = arith.constant 0 : index
    %c0_11 = arith.constant 0 : index
    %c0_12 = arith.constant 0 : index
    %8 = vector.load %arg4[%c0_10, %c0_11, %c0_12] : memref<4x40x200xf32, #tpu.memory_space<vmem>>, vector<1x40x200xf32>
    %9 = vector.shape_cast %8 : vector<1x40x200xf32> to vector<40x200xf32>
    %cst_13 = arith.constant dense<0.000000e+00> : vector<8x200xf32>
    %10 = tpu.matmul %5, %9, %cst_13 {dimension_numbers = #tpu.dot_dimension_numbers<[1], [0], [0], [1], [0, 0, 1, 1], [], []>} : vector<8x40xf32>, vector<40x200xf32>, vector<8x200xf32> -> vector<8x200xf32>
    %c2 = arith.constant 2 : index
    %c0_14 = arith.constant 0 : index
    %c0_15 = arith.constant 0 : index
    %11 = vector.load %arg4[%c2, %c0_14, %c0_15] : memref<4x40x200xf32, #tpu.memory_space<vmem>>, vector<1x40x200xf32>
    %12 = vector.shape_cast %11 : vector<1x40x200xf32> to vector<40x200xf32>
    %cst_16 = arith.constant dense<0.000000e+00> : vector<8x200xf32>
    %13 = tpu.matmul %5, %12, %cst_16 {dimension_numbers = #tpu.dot_dimension_numbers<[1], [0], [0], [1], [0, 0, 1, 1], [], []>} : vector<8x40xf32>, vector<40x200xf32>, vector<8x200xf32> -> vector<8x200xf32>
    %14 = arith.mulf %3, %10 : vector<8x200xf32>
    %cst_17 = arith.constant dense<0.000000e+00> : vector<8x20xf32>
    %15 = tpu.matmul %14, %7, %cst_17 {dimension_numbers = #tpu.dot_dimension_numbers<[1], [0], [0], [1], [0, 0, 1, 1], [], []>} : vector<8x200xf32>, vector<200x20xf32>, vector<8x20xf32> -> vector<8x20xf32>
    %c1 = arith.constant 1 : index
    %c0_18 = arith.constant 0 : index
    %c0_19 = arith.constant 0 : index
    %16 = vector.load %arg4[%c1, %c0_18, %c0_19] : memref<4x40x200xf32, #tpu.memory_space<vmem>>, vector<1x40x200xf32>
    %17 = vector.shape_cast %16 : vector<1x40x200xf32> to vector<40x200xf32>
    %cst_20 = arith.constant dense<0.000000e+00> : vector<8x200xf32>
    %18 = tpu.matmul %5, %17, %cst_20 {dimension_numbers = #tpu.dot_dimension_numbers<[1], [0], [0], [1], [0, 0, 1, 1], [], []>} : vector<8x40xf32>, vector<40x200xf32>, vector<8x200xf32> -> vector<8x200xf32>
    %c3 = arith.constant 3 : index
    %c0_21 = arith.constant 0 : index
    %c0_22 = arith.constant 0 : index
    %19 = vector.load %arg4[%c3, %c0_21, %c0_22] : memref<4x40x200xf32, #tpu.memory_space<vmem>>, vector<1x40x200xf32>
    %20 = vector.shape_cast %19 : vector<1x40x200xf32> to vector<40x200xf32>
    %cst_23 = arith.constant dense<0.000000e+00> : vector<8x200xf32>
    %21 = tpu.matmul %5, %20, %cst_23 {dimension_numbers = #tpu.dot_dimension_numbers<[1], [0], [0], [1], [0, 0, 1, 1], [], []>} : vector<8x40xf32>, vector<40x200xf32>, vector<8x200xf32> -> vector<8x200xf32>
    %22 = arith.mulf %3, %18 : vector<8x200xf32>
    %cst_24 = arith.constant dense<0.000000e+00> : vector<8x20xf32>
    %23 = tpu.matmul %22, %7, %cst_24 {dimension_numbers = #tpu.dot_dimension_numbers<[1], [0], [0], [1], [0, 0, 1, 1], [], []>} : vector<8x200xf32>, vector<200x20xf32>, vector<8x20xf32> -> vector<8x20xf32>
    %24 = arith.maximumf %15, %23 : vector<8x20xf32>
    %25 = arith.subf %15, %24 : vector<8x20xf32>
    %26 = math.exp %25 : vector<8x20xf32>
    %27 = arith.subf %23, %24 : vector<8x20xf32>
    %28 = math.exp %27 : vector<8x20xf32>
    %29 = arith.addf %26, %28 : vector<8x20xf32>
    %30 = tpu.reciprocal %29 {approx = true} : vector<8x20xf32> -> vector<8x20xf32>
    %cst_25 = arith.constant 0.000000e+00 : f32
    %31 = vector.broadcast %cst_25 : f32 to vector<8x200xf32>
    %32 = arith.mulf %26, %30 : vector<8x20xf32>
    %cst_26 = arith.constant dense<0.000000e+00> : vector<8x200xf32>
    %33 = tpu.matmul %32, %7, %cst_26 {dimension_numbers = #tpu.dot_dimension_numbers<[1], [1], [0], [0], [0, 0, 1, 0], [], []>} : vector<8x20xf32>, vector<200x20xf32>, vector<8x200xf32> -> vector<8x200xf32>
    %34 = arith.mulf %33, %13 : vector<8x200xf32>
    %35 = arith.addf %31, %34 : vector<8x200xf32>
    %36 = arith.mulf %28, %30 : vector<8x20xf32>
    %cst_27 = arith.constant dense<0.000000e+00> : vector<8x200xf32>
    %37 = tpu.matmul %36, %7, %cst_27 {dimension_numbers = #tpu.dot_dimension_numbers<[1], [1], [0], [0], [0, 0, 1, 0], [], []>} : vector<8x20xf32>, vector<200x20xf32>, vector<8x200xf32> -> vector<8x200xf32>
    %38 = arith.mulf %37, %21 : vector<8x200xf32>
    %39 = arith.addf %35, %38 : vector<8x200xf32>
    %c0_28 = arith.constant 0 : index
    %c0_29 = arith.constant 0 : index
    %40 = vector.load %arg6[%c0_28, %c0_29] : memref<8x200xf32, #tpu.memory_space<vmem>>, vector<8x200xf32>
    tpu.vector_store %arg6[%c0_28, %c0_29], %39 {strides = array<i32>} : memref<8x200xf32, #tpu.memory_space<vmem>>, vector<8x200xf32>,
    return
  }
  func.func @transform_0(%arg0: i32) -> (i32, i32) {
    %c0_i32 = arith.constant 0 : i32
    %c0_i32_0 = arith.constant 0 : i32
    return %arg0, %c0_i32 : i32, i32
  }
  func.func @transform_1(%arg0: i32) -> (i32, i32) {
    %c0_i32 = arith.constant 0 : i32
    %c0_i32_0 = arith.constant 0 : i32
    %c0_i32_1 = arith.constant 0 : i32
    return %c0_i32, %c0_i32_0 : i32, i32
  }
  func.func @transform_2(%arg0: i32) -> (i32, i32) {
    %c0_i32 = arith.constant 0 : i32
    %c0_i32_0 = arith.constant 0 : i32
    %c0_i32_1 = arith.constant 0 : i32
    return %c0_i32, %c0_i32_0 : i32, i32
  }
  func.func @transform_3(%arg0: i32) -> (i32, i32, i32) {
    %c0_i32 = arith.constant 0 : i32
    %c0_i32_0 = arith.constant 0 : i32
    %c0_i32_1 = arith.constant 0 : i32
    %c0_i32_2 = arith.constant 0 : i32
    return %c0_i32, %c0_i32_0, %c0_i32_1 : i32, i32, i32
  }
  func.func @transform_4(%arg0: i32) -> (i32, i32) {
    %c0_i32 = arith.constant 0 : i32
    %c0_i32_0 = arith.constant 0 : i32
    %c0_i32_1 = arith.constant 0 : i32
    return %c0_i32, %c0_i32_0 : i32, i32
  }
  func.func @transform_5(%arg0: i32) -> (i32, i32) {
    %c0_i32 = arith.constant 0 : i32
    %c0_i32_0 = arith.constant 0 : i32
    return %arg0, %c0_i32 : i32, i32
  }
  func.func @transform_6(%arg0: i32) -> (i32, i32) {
    %c0_i32 = arith.constant 0 : i32
    %c0_i32_0 = arith.constant 0 : i32
    return %arg0, %c0_i32 : i32, i32
  }
}

module attributes {stable_mosaic.version = 11 : i64} {
  func.func @_ffn_kernel(%arg0: i32, %arg1: memref<8x200xf32, #tpu.memory_space<vmem>>, %arg2: memref<8x200xf32, #tpu.memory_space<vmem>>, %arg3: memref<200x200xbf16, #tpu.memory_space<vmem>>, %arg4: memref<200x400xbf16, #tpu.memory_space<vmem>>, %arg5: memref<1x400xf32, #tpu.memory_space<vmem>>, %arg6: memref<400x200xbf16, #tpu.memory_space<vmem>>, %arg7: memref<1x200xf32, #tpu.memory_space<vmem>>, %arg8: memref<1x200xf32, #tpu.memory_space<vmem>>, %arg9: memref<1x200xf32, #tpu.memory_space<vmem>>, %arg10: memref<1x200xf32, #tpu.memory_space<vmem>>, %arg11: memref<1x200xf32, #tpu.memory_space<vmem>>, %arg12: memref<8x200xf32, #tpu.memory_space<vmem>>) attributes {dimension_semantics = [#tpu.dimension_semantics<parallel>], iteration_bounds = array<i64: 2>, scalar_prefetch = 0 : i64, scratch_operands = 0 : i64, tpu.core_type = #tpu.core_type<tc>, window_params = [{transform_indices = @transform_0, window_bounds = array<i64: 8, 200>}, {transform_indices = @transform_1, window_bounds = array<i64: 8, 200>}, {pipeline_mode = #tpu.pipeline_mode<synchronous>, transform_indices = @transform_2, window_bounds = array<i64: 200, 200>}, {pipeline_mode = #tpu.pipeline_mode<synchronous>, transform_indices = @transform_3, window_bounds = array<i64: 200, 400>}, {pipeline_mode = #tpu.pipeline_mode<synchronous>, transform_indices = @transform_4, window_bounds = array<i64: 1, 400>}, {pipeline_mode = #tpu.pipeline_mode<synchronous>, transform_indices = @transform_5, window_bounds = array<i64: 400, 200>}, {pipeline_mode = #tpu.pipeline_mode<synchronous>, transform_indices = @transform_6, window_bounds = array<i64: 1, 200>}, {pipeline_mode = #tpu.pipeline_mode<synchronous>, transform_indices = @transform_7, window_bounds = array<i64: 1, 200>}, {pipeline_mode = #tpu.pipeline_mode<synchronous>, transform_indices = @transform_8, window_bounds = array<i64: 1, 200>}, {pipeline_mode = #tpu.pipeline_mode<synchronous>, transform_indices = @transform_9, window_bounds = array<i64: 1, 200>}, {pipeline_mode = #tpu.pipeline_mode<synchronous>, transform_indices = @transform_10, window_bounds = array<i64: 1, 200>}, {transform_indices = @transform_11, window_bounds = array<i64: 8, 200>}]} {
    %c0 = arith.constant 0 : index
    %c0_0 = arith.constant 0 : index
    %0 = vector.load %arg1[%c0, %c0_0] : memref<8x200xf32, #tpu.memory_space<vmem>>, vector<8x200xf32>
    %1 = arith.truncf %0 : vector<8x200xf32> to vector<8x200xbf16>
    %c0_1 = arith.constant 0 : index
    %c0_2 = arith.constant 0 : index
    %2 = vector.load %arg3[%c0_1, %c0_2] : memref<200x200xbf16, #tpu.memory_space<vmem>>, vector<200x200xbf16>
    %cst = arith.constant dense<0.000000e+00> : vector<8x200xf32>
    %3 = tpu.matmul %1, %2, %cst {dimension_numbers = #tpu.dot_dimension_numbers<[1], [0], [0], [1], [0, 0, 1, 1], [], []>} : vector<8x200xbf16>, vector<200x200xbf16>, vector<8x200xf32> -> vector<8x200xf32>
    %c0_3 = arith.constant 0 : index
    %c0_4 = arith.constant 0 : index
    %4 = vector.load %arg2[%c0_3, %c0_4] : memref<8x200xf32, #tpu.memory_space<vmem>>, vector<8x200xf32>
    %5 = arith.addf %3, %4 : vector<8x200xf32>
    %cst_5 = arith.constant dense<0.000000e+00> : vector<8xf32>
    %6 = vector.multi_reduction <add>, %5, %cst_5 [1] : vector<8x200xf32> to vector<8xf32>
    %7 = vector.shape_cast %6 : vector<8xf32> to vector<8x1xf32>
    %cst_6 = arith.constant 2.000000e+02 : f32
    %8 = vector.broadcast %cst_6 : f32 to vector<8x1xf32>
    %9 = arith.divf %7, %8 : vector<8x1xf32>
    %10 = vector.broadcast %9 : vector<8x1xf32> to vector<8x200xf32>
    %11 = arith.subf %5, %10 : vector<8x200xf32>
    %12 = arith.mulf %11, %11 : vector<8x200xf32>
    %cst_7 = arith.constant dense<0.000000e+00> : vector<8xf32>
    %13 = vector.multi_reduction <add>, %12, %cst_7 [1] : vector<8x200xf32> to vector<8xf32>
    %14 = vector.shape_cast %13 : vector<8xf32> to vector<8x1xf32>
    %cst_8 = arith.constant 2.000000e+02 : f32
    %15 = vector.broadcast %cst_8 : f32 to vector<8x1xf32>
    %16 = arith.divf %14, %15 : vector<8x1xf32>
    %17 = vector.broadcast %9 : vector<8x1xf32> to vector<8x200xf32>
    %18 = arith.subf %5, %17 : vector<8x200xf32>
    %cst_9 = arith.constant 9.99999974E-6 : f32
    %19 = vector.broadcast %cst_9 : f32 to vector<8x1xf32>
    %20 = arith.addf %16, %19 : vector<8x1xf32>
    %21 = math.rsqrt %20 : vector<8x1xf32>
    %22 = vector.broadcast %21 : vector<8x1xf32> to vector<8x200xf32>
    %23 = arith.mulf %18, %22 : vector<8x200xf32>
    %c0_10 = arith.constant 0 : index
    %c0_11 = arith.constant 0 : index
    %24 = vector.load %arg8[%c0_10, %c0_11] : memref<1x200xf32, #tpu.memory_space<vmem>>, vector<1x200xf32>
    %25 = vector.broadcast %24 : vector<1x200xf32> to vector<8x200xf32>
    %26 = arith.mulf %23, %25 : vector<8x200xf32>
    %c0_12 = arith.constant 0 : index
    %c0_13 = arith.constant 0 : index
    %27 = vector.load %arg9[%c0_12, %c0_13] : memref<1x200xf32, #tpu.memory_space<vmem>>, vector<1x200xf32>
    %28 = vector.broadcast %27 : vector<1x200xf32> to vector<8x200xf32>
    %29 = arith.addf %26, %28 : vector<8x200xf32>
    %30 = arith.truncf %29 : vector<8x200xf32> to vector<8x200xbf16>
    %c0_14 = arith.constant 0 : index
    %c0_15 = arith.constant 0 : index
    %31 = vector.load %arg4[%c0_14, %c0_15] : memref<200x400xbf16, #tpu.memory_space<vmem>>, vector<200x400xbf16>
    %cst_16 = arith.constant dense<0.000000e+00> : vector<8x400xf32>
    %32 = tpu.matmul %30, %31, %cst_16 {dimension_numbers = #tpu.dot_dimension_numbers<[1], [0], [0], [1], [0, 0, 1, 1], [], []>} : vector<8x200xbf16>, vector<200x400xbf16>, vector<8x400xf32> -> vector<8x400xf32>
    %c0_17 = arith.constant 0 : index
    %c0_18 = arith.constant 0 : index
    %33 = vector.load %arg5[%c0_17, %c0_18] : memref<1x400xf32, #tpu.memory_space<vmem>>, vector<1x400xf32>
    %34 = vector.broadcast %33 : vector<1x400xf32> to vector<8x400xf32>
    %35 = arith.addf %32, %34 : vector<8x400xf32>
    %cst_19 = arith.constant 0.000000e+00 : f32
    %36 = vector.broadcast %cst_19 : f32 to vector<8x400xf32>
    %37 = arith.maximumf %35, %36 : vector<8x400xf32>
    %38 = arith.truncf %37 : vector<8x400xf32> to vector<8x400xbf16>
    %c0_20 = arith.constant 0 : index
    %c0_21 = arith.constant 0 : index
    %39 = vector.load %arg6[%c0_20, %c0_21] : memref<400x200xbf16, #tpu.memory_space<vmem>>, vector<400x200xbf16>
    %cst_22 = arith.constant dense<0.000000e+00> : vector<8x200xf32>
    %40 = tpu.matmul %38, %39, %cst_22 {dimension_numbers = #tpu.dot_dimension_numbers<[1], [0], [0], [1], [0, 0, 1, 1], [], []>} : vector<8x400xbf16>, vector<400x200xbf16>, vector<8x200xf32> -> vector<8x200xf32>
    %c0_23 = arith.constant 0 : index
    %c0_24 = arith.constant 0 : index
    %41 = vector.load %arg7[%c0_23, %c0_24] : memref<1x200xf32, #tpu.memory_space<vmem>>, vector<1x200xf32>
    %42 = vector.broadcast %41 : vector<1x200xf32> to vector<8x200xf32>
    %43 = arith.addf %40, %42 : vector<8x200xf32>
    %44 = arith.addf %43, %29 : vector<8x200xf32>
    %cst_25 = arith.constant dense<0.000000e+00> : vector<8xf32>
    %45 = vector.multi_reduction <add>, %44, %cst_25 [1] : vector<8x200xf32> to vector<8xf32>
    %46 = vector.shape_cast %45 : vector<8xf32> to vector<8x1xf32>
    %cst_26 = arith.constant 2.000000e+02 : f32
    %47 = vector.broadcast %cst_26 : f32 to vector<8x1xf32>
    %48 = arith.divf %46, %47 : vector<8x1xf32>
    %49 = vector.broadcast %48 : vector<8x1xf32> to vector<8x200xf32>
    %50 = arith.subf %44, %49 : vector<8x200xf32>
    %51 = arith.mulf %50, %50 : vector<8x200xf32>
    %cst_27 = arith.constant dense<0.000000e+00> : vector<8xf32>
    %52 = vector.multi_reduction <add>, %51, %cst_27 [1] : vector<8x200xf32> to vector<8xf32>
    %53 = vector.shape_cast %52 : vector<8xf32> to vector<8x1xf32>
    %cst_28 = arith.constant 2.000000e+02 : f32
    %54 = vector.broadcast %cst_28 : f32 to vector<8x1xf32>
    %55 = arith.divf %53, %54 : vector<8x1xf32>
    %56 = vector.broadcast %48 : vector<8x1xf32> to vector<8x200xf32>
    %57 = arith.subf %44, %56 : vector<8x200xf32>
    %cst_29 = arith.constant 9.99999974E-6 : f32
    %58 = vector.broadcast %cst_29 : f32 to vector<8x1xf32>
    %59 = arith.addf %55, %58 : vector<8x1xf32>
    %60 = math.rsqrt %59 : vector<8x1xf32>
    %61 = vector.broadcast %60 : vector<8x1xf32> to vector<8x200xf32>
    %62 = arith.mulf %57, %61 : vector<8x200xf32>
    %c0_30 = arith.constant 0 : index
    %c0_31 = arith.constant 0 : index
    %63 = vector.load %arg10[%c0_30, %c0_31] : memref<1x200xf32, #tpu.memory_space<vmem>>, vector<1x200xf32>
    %64 = vector.broadcast %63 : vector<1x200xf32> to vector<8x200xf32>
    %65 = arith.mulf %62, %64 : vector<8x200xf32>
    %c0_32 = arith.constant 0 : index
    %c0_33 = arith.constant 0 : index
    %66 = vector.load %arg11[%c0_32, %c0_33] : memref<1x200xf32, #tpu.memory_space<vmem>>, vector<1x200xf32>
    %67 = vector.broadcast %66 : vector<1x200xf32> to vector<8x200xf32>
    %68 = arith.addf %65, %67 : vector<8x200xf32>
    %c0_34 = arith.constant 0 : index
    %c0_35 = arith.constant 0 : index
    %69 = vector.load %arg12[%c0_34, %c0_35] : memref<8x200xf32, #tpu.memory_space<vmem>>, vector<8x200xf32>
    tpu.vector_store %arg12[%c0_34, %c0_35], %68 {strides = array<i32>} : memref<8x200xf32, #tpu.memory_space<vmem>>, vector<8x200xf32>,
    return
  }
  func.func @transform_0(%arg0: i32) -> (i32, i32) {
    %c0_i32 = arith.constant 0 : i32
    %c0_i32_0 = arith.constant 0 : i32
    return %arg0, %c0_i32 : i32, i32
  }
  func.func @transform_1(%arg0: i32) -> (i32, i32) {
    %c0_i32 = arith.constant 0 : i32
    %c0_i32_0 = arith.constant 0 : i32
    return %arg0, %c0_i32 : i32, i32
  }
  func.func @transform_2(%arg0: i32) -> (i32, i32) {
    %c0_i32 = arith.constant 0 : i32
    %c0_i32_0 = arith.constant 0 : i32
    %c0_i32_1 = arith.constant 0 : i32
    return %c0_i32, %c0_i32_0 : i32, i32
  }
  func.func @transform_3(%arg0: i32) -> (i32, i32) {
    %c0_i32 = arith.constant 0 : i32
    %c0_i32_0 = arith.constant 0 : i32
    %c0_i32_1 = arith.constant 0 : i32
    return %c0_i32, %c0_i32_0 : i32, i32
  }
  func.func @transform_4(%arg0: i32) -> (i32, i32) {
    %c0_i32 = arith.constant 0 : i32
    %c0_i32_0 = arith.constant 0 : i32
    %c0_i32_1 = arith.constant 0 : i32
    return %c0_i32, %c0_i32_0 : i32, i32
  }
  func.func @transform_5(%arg0: i32) -> (i32, i32) {
    %c0_i32 = arith.constant 0 : i32
    %c0_i32_0 = arith.constant 0 : i32
    %c0_i32_1 = arith.constant 0 : i32
    return %c0_i32, %c0_i32_0 : i32, i32
  }
  func.func @transform_6(%arg0: i32) -> (i32, i32) {
    %c0_i32 = arith.constant 0 : i32
    %c0_i32_0 = arith.constant 0 : i32
    %c0_i32_1 = arith.constant 0 : i32
    return %c0_i32, %c0_i32_0 : i32, i32
  }
  func.func @transform_7(%arg0: i32) -> (i32, i32) {
    %c0_i32 = arith.constant 0 : i32
    %c0_i32_0 = arith.constant 0 : i32
    %c0_i32_1 = arith.constant 0 : i32
    return %c0_i32, %c0_i32_0 : i32, i32
  }
  func.func @transform_8(%arg0: i32) -> (i32, i32) {
    %c0_i32 = arith.constant 0 : i32
    %c0_i32_0 = arith.constant 0 : i32
    %c0_i32_1 = arith.constant 0 : i32
    return %c0_i32, %c0_i32_0 : i32, i32
  }
  func.func @transform_9(%arg0: i32) -> (i32, i32) {
    %c0_i32 = arith.constant 0 : i32
    %c0_i32_0 = arith.constant 0 : i32
    %c0_i32_1 = arith.constant 0 : i32
    return %c0_i32, %c0_i32_0 : i32, i32
  }
  func.func @transform_10(%arg0: i32) -> (i32, i32) {
    %c0_i32 = arith.constant 0 : i32
    %c0_i32_0 = arith.constant 0 : i32
    %c0_i32_1 = arith.constant 0 : i32
    return %c0_i32, %c0_i32_0 : i32, i32
  }
  func.func @transform_11(%arg0: i32) -> (i32, i32) {
    %c0_i32 = arith.constant 0 : i32
    %c0_i32_0 = arith.constant 0 : i32
    return %arg0, %c0_i32 : i32, i32
  }
}

</mosaic_0001>

<bundles_post_ra>
// kernel: decoder_layer_forward.2
= control target key start
LH: loop header
LB: loop body
LE: loop exit
PB: predicated region body
PF: predicated region fallthrough
CT: control target
= control target key end

     0   :  { %12 = vsyncpa [#allocation3], 0  ;;  %s1782_s21 = smov 0   ;;  %s2412_s0 = inlined_call_operand.vmem [shape: f32[16,200], index: 0, kind: input, shape index: {}]   ;;  %s2413_s1 = inlined_call_operand.hbm [shape: bf16[200,200], index: 1, kind: input, shape index: {}]   ;;  %s2414_s2 = inlined_call_operand.vmem [shape: bf16[200,40], index: 2, kind: input, shape index: {}]   ;;  %s2415_s3 = inlined_call_operand.vmem [shape: f32[4,40,200], index: 3, kind: input, shape index: {}]   ;;  %s2416_s4 = inlined_call_operand.vmem [shape: f32[200,20], index: 4, kind: input, shape index: {}]   ;;  %s2417_s5 = inlined_call_operand.vmem [shape: f32[16,200], index: 5, kind: output, shape index: {0}]   ;;  %s2418_s6 = inlined_call_operand.vmem [shape: f32[16,40], index: 6, kind: output, shape index: {1}]  }
   0x1 LB: > { %s1788_s22 = sadd.s32 4294967295, %s1740_s21   ;;  %p1480_p0 = scmp.ge.s32.totalorder %s1740_s21, 1  ;;  %s1740_s21 = sphi %s1782_s21, %s18_s21  }
   0x2   : > { %p185_p1 = scmp.lt.s32.totalorder %s1740_s21, 3  ;;  %s1742_s23 = smov [#allocation2]  }
   0x3   : > { %s197_s24 = sshll.u32 %s1742_s23, 4  ;;  %p1632_p3 = scmp.eq.s32.totalorder %s1788_s22, 0  ;;  %s198_s24 = int_to_ptr.vmem [resolvable:$true] %s197_s24 }
   0x4   : > { %p1792_p2 = pnand %p1480_p0, %p185_p1  ;;  %s1715_s26 = scalar_lea.vmem %s198_s24, 3200 }
   0x5   : > { %p1716_p7 = scmp.ne.s32.totalorder %s198_s24, %s1715_s26  ;;  %p1723_p10 = scmp.lt.s32.totalorder %s198_s24, %s198_s24 }
   0x6   : > { %p1628_p4 = pneg %p1792_p2  ;;  %p1724_p11 = scmp.lt.s32.totalorder %s1715_s26, %s1715_s26 }
   0x8   : > { %p1629_p5 = pnand %p1632_p3, %p1628_p4  ;;  %p1725_p12 = por %p1724_p11, %p1723_p10 }
   0xa   : > { %p1706_p6 = pneg %p1629_p5 }
   0xc   : > { %p1718_p8 = pnand %p1716_p7, %p1706_p6 }
   0xe   : > { %p1719_p9 = pneg %p1718_p8 }
  0x10   : > { %p1726_p13 = pnand %p1725_p12, %p1719_p9 }
  0x12   : > { %1729 = shalt.err (!%p1726_p13)
}
  0x13   : > { %s1743_s27 = smov 128   ;;  %s1744_s28 = smov 8  }
  0x14   : > { %1631 = dma.hbm_to_vmem [thread:$0]  (!%p1629_p5), %s2413_s1, 3200, %s198_s24, [#allocation3], %s1743_s27, %s1743_s27, %s1744_s28  }
  0x15   : > { %230 = sbr.rel (%p1792_p2) target bundleno = 903 (0x387), region = 40 }
  0x1a   : > { %1735 = dma.done.wait (%p1632_p3), [#allocation3], 3200  }
  0x1b   : > { %1737 = vsyncadd (%p1632_p3), [#allocation3], 4294964096  ;;  %v1745_v0 = vmov 0   ;;  %p264_p0 = scmp.lt.s32.totalorder %s1788_s22, 1  ;;  %v1647_v1 = vld [vmem:[%s2414_s2 + $0x38] sm:$0xff]   ;;  %v1648_v2 = vld [vmem:[%s2414_s2 + $0x30] sm:$0xff]  }
  0x1c   : > { %588 = vmatprep.subr.bf16.mxu1 %v1745_v0  ;;  %v1649_v3 = vld [vmem:[%s2414_s2 + $0x28] sm:$0xff]   ;;  %v1650_v4 = vld [vmem:[%s2414_s2 + $0x20] sm:$0xff]   ;;  %v1651_v5 = vld [vmem:[%s2414_s2 + $0x18] sm:$0xff]   ;;  %vm433_vm0 = vcmask 588800   ;;  %vm437_vm1 = vcmask 1043456   ;;  %vm628_vm2 = vcmask 326656  }
  0x1d   : > { %589 = vmatpush1.bf16.msra.mxu1 %v1647_v1  ;;  %s2421_s22 = smov (!%p264_p0, %s1788_s22), 1  ;;  %v1660_v8 = vld [vmem:[#allocation2 + $0x74] ss:$8 sps:$4 sm:$0xff]   ;;  %v1662_v9 = vld [vmem:[#allocation2 + $0x70] ss:$8 sps:$4 sm:$0xff]   ;;  %v1653_v15 = vld [vmem:[%s2414_s2 + $0x8] sm:$0xff]  }
  0x1e   : > { %590 = vmatprep.subr.bf16.mxu1 %v1745_v0  ;;  %s1622_s13 = sshll.u32 %s2421_s22, 4  ;;  %v1663_v10 = vld [vmem:[#allocation2 + $0x64] ss:$8 sps:$4 sm:$0xff]   ;;  %444 = vmatprep.subr.bf16.mxu0 %v1660_v8  ;;  %v1665_v11 = vld [vmem:[#allocation2 + $0x60] ss:$8 sps:$4 sm:$0xff]   ;;  %v1652_v12 = vld [vmem:[%s2414_s2 + $0x10] sm:$0xff]  }
  0x1f   : > { %s1835_s18 = scalar_lea.vmem %s2412_s0, %s1622_s13  ;;  %445 = vmatpush1.bf16.msra.mxu0 %v1662_v9  ;;  %v1666_v13 = vld [vmem:[#allocation2 + $0x54] ss:$8 sps:$4 sm:$0xff]   ;;  %v1668_v14 = vld [vmem:[#allocation2 + $0x50] ss:$8 sps:$4 sm:$0xff]   ;;  %v1669_v16 = vld [vmem:[#allocation2 + $0x44] ss:$8 sps:$4 sm:$0xff]   ;;  %s273_s28 = scalar_lea.vmem %s2417_s5, %s1622_s13 }
  0x20   : > { %v280_v6 = vld [vmem:[%s1835_s18 + $0x8] sm:$0xff]  ;;  %446 = vmatprep.subr.bf16.mxu0 %v1663_v10  ;;  %v1654_v18 = vld [vmem:[%s2414_s2] sm:$0xff]   ;;  %v1672_v19 = vld [vmem:[#allocation2 + $0x34] ss:$8 sps:$4 sm:$0xff]   ;;  %s1489_s19 = sshll.u32 %s2421_s22, 3  ;;  %vm1145_vm3 = vcmask 162816  }
  0x21   : > { %591 = vmatpush1.bf16.msra.mxu1 %v1648_v2  ;;  %v282_v7 = vpack.c.bf16 %v280_v6, %v280_v6  ;;  %v1671_v17 = vld [vmem:[#allocation2 + $0x40] ss:$8 sps:$4 sm:$0xff]   ;;  %v1674_v21 = vld [vmem:[#allocation2 + $0x30] ss:$8 sps:$4 sm:$0xff]   ;;  %v1675_v22 = vld [vmem:[#allocation2 + $0x24] ss:$8 sps:$4 sm:$0xff]   ;;  %s277_s23 = scalar_lea.vmem %s2418_s6, %s1489_s19 }
  0x22   : > { %592 = vmatprep.subr.bf16.mxu1 %v1745_v0  ;;  %v1655_v20 = vld [vmem:[%s2414_s2 + $0x60] ss:$0 sps:$4 sm:$0xff]   ;;  %v1656_v25 = vld [vmem:[%s2414_s2 + $0x58] sm:$0xff]   ;;  %v1657_v28 = vld [vmem:[%s2414_s2 + $0x50] sm:$0xff]  }
  0x23   : > { %1531 = vmatprep.mubr.msk.bf16.mxu1 %vm433_vm0, %v282_v7  ;;  %1517 = vmatprep.mubr.msk.bf16.mxu0 %vm433_vm0, %v282_v7  ;;  %v586_v23 = vsel %vm437_vm1, %v1655_v20, 0  ;;  %v1677_v24 = vld [vmem:[#allocation2 + $0x20] ss:$8 sps:$4 sm:$0xff]   ;;  %v1678_v26 = vld [vmem:[#allocation2 + $0x14] ss:$8 sps:$4 sm:$0xff]  }
  0x24   : > { %447 = vmatpush1.bf16.msra.mxu0 %v1665_v11  ;;  %v1680_v27 = vld [vmem:[#allocation2 + $0x10] ss:$8 sps:$4 sm:$0xff]   ;;  %v1681_v29 = vld [vmem:[#allocation2 + $0x4] ss:$8 sps:$4 sm:$0xff]   ;;  %v1683_v31 = vld [vmem:[#allocation2] ss:$8 sps:$4 sm:$0xff]  }
  0x25   : > { %593 = vmatpush1.bf16.msra.mxu1 %v1649_v3  ;;  %448 = vmatprep.subr.bf16.mxu0 %v1666_v13  ;;  %v307_v30 = vld [vmem:[#allocation2 + $0xc0] sm:$0xff]  ;;  %v1658_v32 = vld [vmem:[%s2414_s2 + $0x48] sm:$0xff]   ;;  %v1686_v38 = vld [vmem:[#allocation2 + $0xb4] ss:$8 sps:$4 sm:$0xff]  }
  0x26   : > { %594 = vmatprep.subr.bf16.mxu1 %v1745_v0  ;;  %v1515_v33 = vcombine.high %v307_v30, %v307_v30  ;;  %v1514_v34 = vcombine.low %v307_v30, %v307_v30  ;;  %v1659_v35 = vld [vmem:[%s2414_s2 + $0x40] sm:$0xff]   ;;  %v1554_v39 = vld [vmem:[%s2415_s3 + $0x98] sm:$0xff]  ;;  %v1553_v43 = vld [vmem:[%s2415_s3 + $0x90] sm:$0xff] }
  0x27   : > { %v279_v36 = vld [vmem:[%s1835_s18] sm:$0xff]  ;;  %v1688_v41 = vld [vmem:[#allocation2 + $0xb0] ss:$8 sps:$4 sm:$0xff]   ;;  %v1552_v44 = vld [vmem:[%s2415_s3 + $0x88] sm:$0xff] }
  0x28   : > { %449 = vmatpush1.bf16.msra.mxu0 %v1668_v14  ;;  %v439_v37 = vsel %vm437_vm1, %v1514_v34, 0  ;;  %v281_v40 = vpack.c.bf16 %v279_v36, %v279_v36  ;;  %v1689_v42 = vld [vmem:[#allocation2 + $0xa4] ss:$8 sps:$4 sm:$0xff]   ;;  %v1691_v45 = vld [vmem:[#allocation2 + $0xa0] ss:$8 sps:$4 sm:$0xff]   ;;  %v1550_v48 = vld [vmem:[%s2415_s3 + $0x78] sm:$0xff] }
  0x29   : > { %595 = vmatpush1.bf16.msra.mxu1 %v1650_v4  ;;  %450 = vmatprep.subr.bf16.mxu0 %v1669_v16  ;;  %v1551_v46 = vld [vmem:[%s2415_s3 + $0x80] sm:$0xff]  ;;  %v1692_v47 = vld [vmem:[#allocation2 + $0x94] ss:$8 sps:$4 sm:$0xff]   ;;  %v1548_v50 = vld [vmem:[%s2415_s3 + $0x68] sm:$0xff] }
  0x2a   : > { %596 = vmatprep.subr.bf16.mxu1 %v1745_v0  ;;  %v1549_v49 = vld [vmem:[%s2415_s3 + $0x70] sm:$0xff]  ;;  %v1547_v52 = vld [vmem:[%s2415_s3 + $0x60] sm:$0xff]  ;;  %v1546_v54 = vld [vmem:[%s2415_s3 + $0x58] sm:$0xff] }
  0x2b   : > { %v1694_v51 = vld [vmem:[#allocation2 + $0x90] ss:$8 sps:$4 sm:$0xff]   ;;  %v1695_v53 = vld [vmem:[#allocation2 + $0x84] ss:$8 sps:$4 sm:$0xff]   ;;  %v1697_v56 = vld [vmem:[#allocation2 + $0x80] ss:$8 sps:$4 sm:$0xff]  }
  0x2c   : > { %451 = vmatpush1.bf16.msra.mxu0 %v1671_v17  ;;  %v1545_v55 = vld [vmem:[%s2415_s3 + $0x50] sm:$0xff]  ;;  %v664_v57 = vld [vmem:[%s2415_s3 + $0x48] sm:$0xff]  ;;  %v663_v58 = vld [vmem:[%s2415_s3 + $0x40] sm:$0xff] }
  0x2d   : > { %597 = vmatpush1.bf16.msra.mxu1 %v1651_v5  ;;  %452 = vmatprep.subr.bf16.mxu0 %v1672_v19  ;;  %v662_v59 = vld [vmem:[%s2415_s3 + $0x38] sm:$0xff]  ;;  %v661_v60 = vld [vmem:[%s2415_s3 + $0x30] sm:$0xff]  ;;  %v660_v61 = vld [vmem:[%s2415_s3 + $0x28] sm:$0xff]  ;;  %v1746_v5 = vmov 0.0  }
  0x2e   : > { %598 = vmatprep.subr.bf16.mxu1 %v1745_v0  ;;  %v659_v62 = vld [vmem:[%s2415_s3 + $0x20] sm:$0xff]  ;;  %v658_v63 = vld [vmem:[%s2415_s3 + $0x18] sm:$0xff]  ;;  %v656_v1 = vld [vmem:[%s2415_s3 + $0x8] sm:$0xff] }
  0x2f   : > { %v655_v2 = vld [vmem:[%s2415_s3] sm:$0xff]  ;;  %v1542_v3 = vld [vmem:[%s2415_s3 + $0xe8] sm:$0xff]  ;;  %v1565_v4 = vld [vmem:[%s2415_s3 + $0x138] sm:$0xff] }
  0x30   : > { %453 = vmatpush1.bf16.msra.mxu0 %v1674_v21  ;;  %v1541_v6 = vld [vmem:[%s2415_s3 + $0xe0] sm:$0xff]  ;;  %v1564_v7 = vld [vmem:[%s2415_s3 + $0x130] sm:$0xff]  ;;  %v1540_v9 = vld [vmem:[%s2415_s3 + $0xd8] sm:$0xff] }
  0x31   : > { %599 = vmatpush1.bf16.msra.mxu1 %v1652_v12  ;;  %454 = vmatprep.subr.bf16.mxu0 %v1675_v22  ;;  %v1563_v10 = vld [vmem:[%s2415_s3 + $0x128] sm:$0xff]  ;;  %v1539_v11 = vld [vmem:[%s2415_s3 + $0xd0] sm:$0xff]  ;;  %v1562_v12 = vld [vmem:[%s2415_s3 + $0x120] sm:$0xff] }
  0x32   : > { %600 = vmatprep.subr.bf16.mxu1 %v1745_v0  ;;  %v1538_v14 = vld [vmem:[%s2415_s3 + $0xc8] sm:$0xff]  ;;  %v1537_v16 = vld [vmem:[%s2415_s3 + $0xc0] sm:$0xff]  ;;  %v1560_v17 = vld [vmem:[%s2415_s3 + $0x110] sm:$0xff] }
  0x33   : > { %v1536_v19 = vld [vmem:[%s2415_s3 + $0xb8] sm:$0xff]  ;;  %v1559_v20 = vld [vmem:[%s2415_s3 + $0x108] sm:$0xff]  ;;  %v1535_v21 = vld [vmem:[%s2415_s3 + $0xb0] sm:$0xff] }
  0x34   : > { %455 = vmatpush1.bf16.msra.mxu0 %v1677_v24  ;;  %v1558_v22 = vld [vmem:[%s2415_s3 + $0x100] sm:$0xff]  ;;  %v1534_v24 = vld [vmem:[%s2415_s3 + $0xa8] sm:$0xff]  ;;  %v2055_v34 = vld [vmem:[%s2416_s4 + $0x58] sm:$0xff] }
  0x35   : > { %601 = vmatpush1.bf16.msra.mxu1 %v1653_v15  ;;  %456 = vmatprep.subr.bf16.mxu0 %v1678_v26  ;;  %v1561_v15 = vld [vmem:[%s2415_s3 + $0x118] sm:$0xff]  ;;  %v1533_v26 = vld [vmem:[%s2415_s3 + $0xa0] sm:$0xff]  ;;  %v2033_v30 = vld [vmem:[%s2416_s4 + $0x68] sm:$0xff] }
  0x36   : > { %602 = vmatprep.subr.bf16.mxu1 %v1745_v0  ;;  %v2064_v36 = vld [vmem:[%s2416_s4 + $0x50] sm:$0xff] }
  0x38   : > { %457 = vmatpush1.bf16.msra.mxu0 %v1680_v27  ;;  %v1556_v27 = vld [vmem:[%s2415_s3 + $0xf0] sm:$0xff] }
  0x39   : > { %603 = vmatpush1.bf16.msra.mxu1 %v1654_v18  ;;  %458 = vmatprep.subr.bf16.mxu0 %v1681_v29  ;;  %v2024_v29 = vld [vmem:[%s2416_s4 + $0x70] sm:$0xff] }
  0x3a   : > { %610 = vmatprep.subr.bf16.mxu1 %v1745_v0 }
  0x3c   : > { %459 = vmatpush1.bf16.msra.mxu0 %v1683_v31 }
  0x3d   : > { %611 = vmatpush2.bf16.msra.mxu1 %v586_v23  ;;  %1516 = vmatprep.subr.msk.bf16.mxu0 %vm437_vm1, %v1515_v33 }
  0x3e   : > { %612 = vmatprep.subr.bf16.mxu1 %v1745_v0 }
  0x40   : > { %467 = vmatpush2.bf16.msra.mxu0 %v439_v37 }
  0x41   : > { %613 = vmatpush2.bf16.msra.mxu1 %v1656_v25  ;;  %468 = vmatprep.subr.bf16.mxu0 %v1686_v38  ;;  %v1557_v25 = vld [vmem:[%s2415_s3 + $0xf8] sm:$0xff]  ;;  %v2073_v38 = vld [vmem:[%s2416_s4 + $0x48] sm:$0xff] }
  0x42   : > { %614 = vmatprep.subr.bf16.mxu1 %v1745_v0 }
  0x44   : > { %469 = vmatpush2.bf16.msra.mxu0 %v1688_v41  ;;  %v2100_v41 = vld [vmem:[%s2416_s4 + $0x30] sm:$0xff] }
  0x45   : > { %615 = vmatpush2.bf16.msra.mxu1 %v1657_v28  ;;  %470 = vmatprep.subr.bf16.mxu0 %v1689_v42  ;;  %v2015_v28 = vld [vmem:[%s2416_s4 + $0x78] sm:$0xff]  ;;  %v2109_v42 = vld [vmem:[%s2416_s4 + $0x28] sm:$0xff] }
  0x46   : > { %616 = vmatprep.subr.bf16.mxu1 %v1745_v0 }
  0x48   : > { %471 = vmatpush2.bf16.msra.mxu0 %v1691_v45  ;;  %v2136_v45 = vld [vmem:[%s2416_s4 + $0x10] sm:$0xff] }
  0x49   : > { %617 = vmatpush2.bf16.msra.mxu1 %v1658_v32  ;;  %472 = vmatprep.subr.bf16.mxu0 %v1692_v47  ;;  %v2044_v32 = vld [vmem:[%s2416_s4 + $0x60] sm:$0xff] }
  0x4a   : > { %618 = vmatprep.subr.bf16.mxu1 %v1745_v0  ;;  %v657_v0 = vld [vmem:[%s2415_s3 + $0x10] sm:$0xff]  ;;  %v2154_v47 = vld [vmem:[%s2416_s4] sm:$0xff] }
  0x4c   : > { %473 = vmatpush2.bf16.msra.mxu0 %v1694_v51  ;;  %v2190_v51 = vld [vmem:[%s2416_s4 + $0xa8] sm:$0xff] }
  0x4d   : > { %619 = vmatpush2.bf16.msra.mxu1 %v1659_v35  ;;  %474 = vmatprep.subr.bf16.mxu0 %v1695_v53  ;;  %v2208_v53 = vld [vmem:[%s2416_s4 + $0x98] sm:$0xff] }
  0x4e   : > { %929 = vmatprep.subr.mxu1 %v1554_v39  ;;  %v2082_v39 = vld [vmem:[%s2416_s4 + $0x40] sm:$0xff] }
  0x50   : > { %621 = vmatmul.mubr.bf16.vlgmr.msra.gmra.mxu1 %v281_v40  ;;  %475 = vmatpush2.bf16.msra.mxu0 %v1697_v56  ;;  %v2235_v56 = vld [vmem:[%s2416_s4 + $0x80] sm:$0xff] }
  0x51   : > { %930 = vmatpush1.msra.mxu1 %v1553_v43  ;;  %690 = vmatprep.subr.mxu0 %v664_v57  ;;  %v2118_v43 = vld [vmem:[%s2416_s4 + $0x20] sm:$0xff] }
  0x52   : > { %931 = vmatprep.subr.mxu1 %v1552_v44  ;;  %971 = vmatprep.mubr.f32.mxu1 %v1746_v5  ;;  %v2127_v44 = vld [vmem:[%s2416_s4 + $0x18] sm:$0xff] }
  0x53   : > { %932 = vmatpush1.msra.mxu1 %v1551_v46  ;;  %477 = vmatmul.mubr.bf16.vlgmr.msra.gmra.mxu0 %v281_v40  ;;  %v2091_v40 = vld [vmem:[%s2416_s4 + $0x38] sm:$0xff]  ;;  %v2145_v46 = vld [vmem:[%s2416_s4 + $0x8] sm:$0xff] }
  0x54   : > { %933 = vmatprep.subr.mxu1 %v1550_v48  ;;  %691 = vmatpush1.msra.mxu0 %v663_v58  ;;  %v2163_v48 = vld [vmem:[%s2416_s4 + $0xc0] sm:$0xff] }
  0x55   : > { %934 = vmatpush1.msra.mxu1 %v1549_v49  ;;  %692 = vmatprep.subr.mxu0 %v662_v59  ;;  %v2172_v49 = vld [vmem:[%s2416_s4 + $0xb8] sm:$0xff] }
  0x56   : > { %935 = vmatprep.subr.mxu1 %v1548_v50  ;;  %693 = vmatpush1.msra.mxu0 %v661_v60  ;;  %v2181_v50 = vld [vmem:[%s2416_s4 + $0xb0] sm:$0xff] }
  0x57   : > { %936 = vmatpush1.msra.mxu1 %v1547_v52  ;;  %694 = vmatprep.subr.mxu0 %v660_v61  ;;  %v2199_v52 = vld [vmem:[%s2416_s4 + $0xa0] sm:$0xff] }
  0x58   : > { %937 = vmatprep.subr.mxu1 %v1546_v54  ;;  %695 = vmatpush1.msra.mxu0 %v659_v62  ;;  %v2221_v54 = vld [vmem:[%s2416_s4 + $0x90] sm:$0xff] }
  0x59   : > { %938 = vmatpush1.msra.mxu1 %v1545_v55  ;;  %696 = vmatprep.subr.mxu0 %v658_v63  ;;  %v2230_v55 = vld [vmem:[%s2416_s4 + $0x88] sm:$0xff] }
  0x5a   : > { %697 = vmatpush1.msra.mxu0 %v657_v0  ;;  %732 = vmatprep.mubr.f32.mxu0 %v1746_v5 }
  0x5b   : > { %698 = vmatprep.subr.mxu0 %v656_v1  ;;  %1011 = vmatprep.subr.mxu1 %v1565_v4 }
  0x5c   : > { %699 = vmatpush1.msra.mxu0 %v655_v2 }
  0x5d   : > { %772 = vmatprep.subr.mxu0 %v1542_v3 }
 0x110   : > { %v622_v8 = vpop.f32.mrf.mxu1 }
 0x111   : > { %629 = vst.msk [vmem:[%s277_s23] sm:$0xff] %vm628_vm2, %v622_v8  ;;  %1532 = vmatmul.mubr.msk.f32.vlgmr.msra.gmra.mxu0 %vm628_vm2, %v622_v8  ;;  %1555 = vmatmul.mubr.msk.f32.vlgmr.msra.gmra.mxu1 %vm628_vm2, %v622_v8 }
 0x112   : > { %773 = vmatpush1.msra.mxu0 %v1541_v6  ;;  %1012 = vmatpush1.msra.mxu1 %v1564_v7  ;;  %v624_v13 = vpop.f32.mrf.mxu1 }
 0x113   : > { %774 = vmatprep.subr.mxu0 %v1540_v9  ;;  %1013 = vmatprep.subr.mxu1 %v1563_v10  ;;  %v2035_v31 = vpop.f32.mrf.mxu0 }
 0x114   : > { %775 = vmatpush1.msra.mxu0 %v1539_v11  ;;  %1014 = vmatpush1.msra.mxu1 %v1562_v12  ;;  %v625_v18 = vpop.f32.mrf.mxu1 }
 0x115   : > { %776 = vmatprep.subr.mxu0 %v1538_v14  ;;  %1015 = vmatprep.subr.mxu1 %v1561_v15  ;;  %v2046_v33 = vpop.f32.mrf.mxu0 }
 0x116   : > { %777 = vmatpush1.msra.mxu0 %v1537_v16  ;;  %1016 = vmatpush1.msra.mxu1 %v1560_v17  ;;  %v626_v23 = vpop.f32.mrf.mxu1 }
 0x117   : > { %778 = vmatprep.subr.mxu0 %v1536_v19  ;;  %1017 = vmatprep.subr.mxu1 %v1559_v20  ;;  %v482_v35 = vpop.f32.mrf.mxu0 }
 0x118   : > { %779 = vmatpush1.msra.mxu0 %v1535_v21  ;;  %1018 = vmatpush1.msra.mxu1 %v1558_v22 }
 0x119   : > { %780 = vmatprep.subr.mxu0 %v1534_v24  ;;  %1019 = vmatprep.subr.mxu1 %v1557_v25  ;;  %v483_v37 = vpop.f32.mrf.mxu0 }
 0x11a   : > { %781 = vmatpush1.msra.mxu0 %v1533_v26  ;;  %814 = vmatprep.mubr.f32.mxu0 %v1746_v5 }
 0x11b   : > { %1020 = vmatpush1.msra.mxu1 %v1556_v27  ;;  %1053 = vmatprep.mubr.f32.mxu1 %v1746_v5 }
 0x11c   : > { %1543 = vmatmul.mubr.msk.f32.vlgmr.msra.gmra.mxu0 %vm628_vm2, %v622_v8  ;;  %1566 = vmatmul.mubr.msk.f32.vlgmr.msra.gmra.mxu1 %vm628_vm2, %v622_v8 }
 0x11d   : > { %826 = vmatprep.subr.mxu0 %v1746_v5  ;;  %1065 = vmatprep.subr.mxu1 %v1746_v5 }
 0x11e   : > { %827 = vmatpush1.msra.mxu0 %v2015_v28  ;;  %1066 = vmatpush1.msra.mxu1 %v2015_v28 }
 0x11f   : > { %828 = vmatprep.subr.mxu0 %v1746_v5  ;;  %1067 = vmatprep.subr.mxu1 %v1746_v5 }
 0x120   : > { %829 = vmatpush1.msra.mxu0 %v2024_v29  ;;  %1068 = vmatpush1.msra.mxu1 %v2024_v29 }
 0x121   : > { %830 = vmatprep.subr.mxu0 %v1746_v5  ;;  %1069 = vmatprep.subr.mxu1 %v1746_v5 }
 0x122   : > { %831 = vmatpush1.msra.mxu0 %v2033_v30  ;;  %1070 = vmatpush1.msra.mxu1 %v2033_v30 }
 0x123   : > { %832 = vmatprep.subr.mxu0 %v1746_v5  ;;  %1071 = vmatprep.subr.mxu1 %v1746_v5 }
 0x124   : > { %833 = vmatpush1.msra.mxu0 %v2044_v32  ;;  %1072 = vmatpush1.msra.mxu1 %v2044_v32 }
 0x125   : > { %834 = vmatprep.subr.mxu0 %v1746_v5  ;;  %1073 = vmatprep.subr.mxu1 %v1746_v5 }
 0x126   : > { %835 = vmatpush1.msra.mxu0 %v2055_v34  ;;  %1074 = vmatpush1.msra.mxu1 %v2055_v34 }
 0x127   : > { %836 = vmatprep.subr.mxu0 %v1746_v5  ;;  %1075 = vmatprep.subr.mxu1 %v1746_v5 }
 0x128   : > { %837 = vmatpush1.msra.mxu0 %v2064_v36  ;;  %1076 = vmatpush1.msra.mxu1 %v2064_v36 }
 0x129   : > { %838 = vmatprep.subr.mxu0 %v1746_v5  ;;  %1077 = vmatprep.subr.mxu1 %v1746_v5 }
 0x12a   : > { %839 = vmatpush1.msra.mxu0 %v2073_v38  ;;  %1078 = vmatpush1.msra.mxu1 %v2073_v38 }
 0x12b   : > { %840 = vmatprep.subr.mxu0 %v1746_v5  ;;  %1079 = vmatprep.subr.mxu1 %v1746_v5 }
 0x12c   : > { %841 = vmatpush1.msra.mxu0 %v2082_v39  ;;  %1080 = vmatpush1.msra.mxu1 %v2082_v39 }
 0x12d   : > { %842 = vmatprep.subr.mxu0 %v1746_v5  ;;  %1081 = vmatprep.subr.mxu1 %v1746_v5 }
 0x12e   : > { %843 = vmatpush1.msra.mxu0 %v2091_v40  ;;  %1082 = vmatpush1.msra.mxu1 %v2091_v40 }
 0x12f   : > { %844 = vmatprep.subr.mxu0 %v1746_v5  ;;  %1083 = vmatprep.subr.mxu1 %v1746_v5 }
 0x130   : > { %845 = vmatpush1.msra.mxu0 %v2100_v41  ;;  %1084 = vmatpush1.msra.mxu1 %v2100_v41 }
 0x131   : > { %846 = vmatprep.subr.mxu0 %v1746_v5  ;;  %1085 = vmatprep.subr.mxu1 %v1746_v5 }
 0x132   : > { %847 = vmatpush1.msra.mxu0 %v2109_v42  ;;  %1086 = vmatpush1.msra.mxu1 %v2109_v42 }
 0x133   : > { %848 = vmatprep.subr.mxu0 %v1746_v5  ;;  %1087 = vmatprep.subr.mxu1 %v1746_v5 }
 0x134   : > { %849 = vmatpush1.msra.mxu0 %v2118_v43  ;;  %1088 = vmatpush1.msra.mxu1 %v2118_v43 }
 0x135   : > { %850 = vmatprep.subr.mxu0 %v1746_v5  ;;  %1089 = vmatprep.subr.mxu1 %v1746_v5 }
 0x136   : > { %851 = vmatpush1.msra.mxu0 %v2127_v44  ;;  %1090 = vmatpush1.msra.mxu1 %v2127_v44 }
 0x137   : > { %852 = vmatprep.subr.mxu0 %v1746_v5  ;;  %1091 = vmatprep.subr.mxu1 %v1746_v5 }
 0x138   : > { %853 = vmatpush1.msra.mxu0 %v2136_v45  ;;  %1092 = vmatpush1.msra.mxu1 %v2136_v45 }
 0x139   : > { %854 = vmatprep.subr.mxu0 %v1746_v5  ;;  %1093 = vmatprep.subr.mxu1 %v1746_v5 }
 0x13a   : > { %855 = vmatpush1.msra.mxu0 %v2145_v46  ;;  %1094 = vmatpush1.msra.mxu1 %v2145_v46 }
 0x13b   : > { %856 = vmatprep.subr.mxu0 %v1746_v5  ;;  %1095 = vmatprep.subr.mxu1 %v1746_v5 }
 0x13c   : > { %857 = vmatpush1.msra.mxu0 %v2154_v47  ;;  %1096 = vmatpush1.msra.mxu1 %v2154_v47 }
 0x13d   : > { %872 = vmatprep.subr.mxu0 %v1746_v5  ;;  %1111 = vmatprep.subr.mxu1 %v1746_v5 }
 0x13e   : > { %873 = vmatpush2.msra.mxu0 %v2163_v48  ;;  %1112 = vmatpush2.msra.mxu1 %v2163_v48 }
 0x13f   : > { %874 = vmatprep.subr.mxu0 %v1746_v5  ;;  %1113 = vmatprep.subr.mxu1 %v1746_v5 }
 0x140   : > { %875 = vmatpush2.msra.mxu0 %v2172_v49  ;;  %1114 = vmatpush2.msra.mxu1 %v2172_v49 }
 0x141   : > { %876 = vmatprep.subr.mxu0 %v1746_v5  ;;  %1115 = vmatprep.subr.mxu1 %v1746_v5 }
 0x142   : > { %877 = vmatpush2.msra.mxu0 %v2181_v50  ;;  %1116 = vmatpush2.msra.mxu1 %v2181_v50 }
 0x143   : > { %878 = vmatprep.subr.mxu0 %v1746_v5  ;;  %1117 = vmatprep.subr.mxu1 %v1746_v5 }
 0x144   : > { %879 = vmatpush2.msra.mxu0 %v2190_v51  ;;  %1118 = vmatpush2.msra.mxu1 %v2190_v51 }
 0x145   : > { %880 = vmatprep.subr.mxu0 %v1746_v5  ;;  %1119 = vmatprep.subr.mxu1 %v1746_v5 }
 0x146   : > { %881 = vmatpush2.msra.mxu0 %v2199_v52  ;;  %1120 = vmatpush2.msra.mxu1 %v2199_v52 }
 0x147   : > { %882 = vmatprep.subr.mxu0 %v1746_v5  ;;  %1121 = vmatprep.subr.mxu1 %v1746_v5 }
 0x148   : > { %883 = vmatpush2.msra.mxu0 %v2208_v53  ;;  %1122 = vmatpush2.msra.mxu1 %v2208_v53 }
 0x149   : > { %884 = vmatprep.subr.mxu0 %v1746_v5  ;;  %1123 = vmatprep.subr.mxu1 %v1746_v5 }
 0x14a   : > { %885 = vmatpush2.msra.mxu0 %v2221_v54  ;;  %1124 = vmatpush2.msra.mxu1 %v2221_v54 }
 0x14b   : > { %886 = vmatprep.subr.mxu0 %v1746_v5  ;;  %1125 = vmatprep.subr.mxu1 %v1746_v5 }
 0x14c   : > { %887 = vmatpush2.msra.mxu0 %v2230_v55  ;;  %1126 = vmatpush2.msra.mxu1 %v2230_v55 }
 0x14d   : > { %888 = vmatprep.subr.mxu0 %v1746_v5  ;;  %1127 = vmatprep.subr.mxu1 %v1746_v5 }
 0x14e   : > { %889 = vmatpush2.msra.mxu0 %v2235_v56  ;;  %1128 = vmatpush2.msra.mxu1 %v2235_v56 }
 0x14f   : > { %1224 = vmatprep.subr.mxu0 %v1746_v5  ;;  %1303 = vmatprep.subr.mxu1 %v1746_v5 }
 0x1d1   : > { %v734_v57 = vpop.f32.mrf.mxu0  ;;  %v973_v58 = vpop.f32.mrf.mxu1 }
 0x1d2   : > { %v821_v63 = vmul.f32 %v734_v57, %v2035_v31  ;;  %v1060_v0 = vmul.f32 %v973_v58, %v2035_v31 }
 0x1d3   : > { %v736_v59 = vpop.f32.mrf.mxu0  ;;  %v975_v60 = vpop.f32.mrf.mxu1 }
 0x1d4   : > { %v822_v61 = vmul.f32 %v736_v59, %v2046_v33  ;;  %v1061_v62 = vmul.f32 %v975_v60, %v2046_v33 }
 0x1d6   : > { %1544 = vmatprep.mubr.msk.f32.mxu0 %vm433_vm0, %v822_v61  ;;  %1567 = vmatprep.mubr.msk.f32.mxu1 %vm433_vm0, %v1061_v62 }
 0x1d7   : > { %891 = vmatmul.mubr.f32.vlgmr.msra.gmra.mxu0 %v821_v63  ;;  %1130 = vmatmul.mubr.f32.vlgmr.msra.gmra.mxu1 %v1060_v0 }
 0x1d8   : > { %1568 = vmatpush1.xpose.msk.msra.mxu0 %vm1145_vm3, %v2015_v28  ;;  %1594 = vmatpush1.xpose.msk.msra.mxu1 %vm1145_vm3, %v2015_v28 }
 0x1d9   : > { %1226 = vmatprep.subr.mxu0 %v1746_v5  ;;  %1305 = vmatprep.subr.mxu1 %v1746_v5 }
 0x1da   : > { %1288 = vmatprep.mubr.f32.mxu0 %v1746_v5  ;;  %1367 = vmatprep.mubr.f32.mxu1 %v1746_v5 }
 0x1dc   : > { %1569 = vmatpush1.xpose.msk.msra.mxu0 %vm1145_vm3, %v2024_v29  ;;  %1595 = vmatpush1.xpose.msk.msra.mxu1 %vm1145_vm3, %v2024_v29  ;;  %v816_v1 = vpop.f32.mrf.mxu0  ;;  %v1055_v2 = vpop.f32.mrf.mxu1 }
 0x1dd   : > { %1228 = vmatprep.subr.mxu0 %v1746_v5  ;;  %1307 = vmatprep.subr.mxu1 %v1746_v5 }
 0x1de   : > { %v818_v3 = vpop.f32.mrf.mxu0  ;;  %v1057_v4 = vpop.f32.mrf.mxu1 }
 0x1e0   : > { %1570 = vmatpush1.xpose.msk.msra.mxu0 %vm1145_vm3, %v2033_v30  ;;  %1596 = vmatpush1.xpose.msk.msra.mxu1 %vm1145_vm3, %v2033_v30 }
 0x1e1   : > { %1230 = vmatprep.subr.mxu0 %v1746_v5  ;;  %1309 = vmatprep.subr.mxu1 %v1746_v5 }
 0x1e4   : > { %1571 = vmatpush1.xpose.msk.msra.mxu0 %vm1145_vm3, %v2044_v32  ;;  %1597 = vmatpush1.xpose.msk.msra.mxu1 %vm1145_vm3, %v2044_v32 }
 0x1e5   : > { %1232 = vmatprep.subr.mxu0 %v1746_v5  ;;  %1311 = vmatprep.subr.mxu1 %v1746_v5 }
 0x1e8   : > { %1572 = vmatpush1.xpose.msk.msra.mxu0 %vm1145_vm3, %v2055_v34  ;;  %1598 = vmatpush1.xpose.msk.msra.mxu1 %vm1145_vm3, %v2055_v34 }
 0x1e9   : > { %1234 = vmatprep.subr.mxu0 %v1746_v5  ;;  %1313 = vmatprep.subr.mxu1 %v1746_v5 }
 0x1ec   : > { %1573 = vmatpush1.xpose.msk.msra.mxu0 %vm1145_vm3, %v2064_v36  ;;  %1599 = vmatpush1.xpose.msk.msra.mxu1 %vm1145_vm3, %v2064_v36 }
 0x1ed   : > { %1236 = vmatprep.subr.mxu0 %v1746_v5  ;;  %1315 = vmatprep.subr.mxu1 %v1746_v5 }
 0x1f0   : > { %1574 = vmatpush1.xpose.msk.msra.mxu0 %vm1145_vm3, %v2073_v38  ;;  %1600 = vmatpush1.xpose.msk.msra.mxu1 %vm1145_vm3, %v2073_v38 }
 0x1f1   : > { %1238 = vmatprep.subr.mxu0 %v1746_v5  ;;  %1317 = vmatprep.subr.mxu1 %v1746_v5 }
 0x1f4   : > { %1575 = vmatpush1.xpose.msk.msra.mxu0 %vm1145_vm3, %v2082_v39  ;;  %1601 = vmatpush1.xpose.msk.msra.mxu1 %vm1145_vm3, %v2082_v39 }
 0x1f5   : > { %1240 = vmatprep.subr.mxu0 %v1746_v5  ;;  %1319 = vmatprep.subr.mxu1 %v1746_v5 }
 0x1f8   : > { %1576 = vmatpush1.xpose.msk.msra.mxu0 %vm1145_vm3, %v2091_v40  ;;  %1602 = vmatpush1.xpose.msk.msra.mxu1 %vm1145_vm3, %v2091_v40 }
 0x1f9   : > { %1242 = vmatprep.subr.mxu0 %v1746_v5  ;;  %1321 = vmatprep.subr.mxu1 %v1746_v5 }
 0x1fc   : > { %1577 = vmatpush1.xpose.msk.msra.mxu0 %vm1145_vm3, %v2100_v41  ;;  %1603 = vmatpush1.xpose.msk.msra.mxu1 %vm1145_vm3, %v2100_v41 }
 0x1fd   : > { %1244 = vmatprep.subr.mxu0 %v1746_v5  ;;  %1323 = vmatprep.subr.mxu1 %v1746_v5 }
 0x200   : > { %1578 = vmatpush1.xpose.msk.msra.mxu0 %vm1145_vm3, %v2109_v42  ;;  %1604 = vmatpush1.xpose.msk.msra.mxu1 %vm1145_vm3, %v2109_v42 }
 0x201   : > { %1246 = vmatprep.subr.mxu0 %v1746_v5  ;;  %1325 = vmatprep.subr.mxu1 %v1746_v5 }
 0x204   : > { %1579 = vmatpush1.xpose.msk.msra.mxu0 %vm1145_vm3, %v2118_v43  ;;  %1605 = vmatpush1.xpose.msk.msra.mxu1 %vm1145_vm3, %v2118_v43 }
 0x205   : > { %1248 = vmatprep.subr.mxu0 %v1746_v5  ;;  %1327 = vmatprep.subr.mxu1 %v1746_v5 }
 0x208   : > { %1580 = vmatpush1.xpose.msk.msra.mxu0 %vm1145_vm3, %v2127_v44  ;;  %1606 = vmatpush1.xpose.msk.msra.mxu1 %vm1145_vm3, %v2127_v44 }
 0x209   : > { %1250 = vmatprep.subr.mxu0 %v1746_v5  ;;  %1329 = vmatprep.subr.mxu1 %v1746_v5 }
 0x20c   : > { %1581 = vmatpush1.xpose.msk.msra.mxu0 %vm1145_vm3, %v2136_v45  ;;  %1607 = vmatpush1.xpose.msk.msra.mxu1 %vm1145_vm3, %v2136_v45 }
 0x20d   : > { %1252 = vmatprep.subr.mxu0 %v1746_v5  ;;  %1331 = vmatprep.subr.mxu1 %v1746_v5 }
 0x210   : > { %1582 = vmatpush1.xpose.msk.msra.mxu0 %vm1145_vm3, %v2145_v46  ;;  %1608 = vmatpush1.xpose.msk.msra.mxu1 %vm1145_vm3, %v2145_v46 }
 0x211   : > { %1254 = vmatprep.subr.mxu0 %v1746_v5  ;;  %1333 = vmatprep.subr.mxu1 %v1746_v5 }
 0x214   : > { %1583 = vmatpush1.xpose.msk.msra.mxu0 %vm1145_vm3, %v2154_v47  ;;  %1609 = vmatpush1.xpose.msk.msra.mxu1 %vm1145_vm3, %v2154_v47 }
 0x215   : > { %1270 = vmatprep.subr.mxu0 %v1746_v5  ;;  %1349 = vmatprep.subr.mxu1 %v1746_v5 }
 0x218   : > { %1584 = vmatpush2.xpose.msk.msra.mxu0 %vm1145_vm3, %v2163_v48  ;;  %1610 = vmatpush2.xpose.msk.msra.mxu1 %vm1145_vm3, %v2163_v48 }
 0x219   : > { %1272 = vmatprep.subr.mxu0 %v1746_v5  ;;  %1351 = vmatprep.subr.mxu1 %v1746_v5 }
 0x21c   : > { %1585 = vmatpush2.xpose.msk.msra.mxu0 %vm1145_vm3, %v2172_v49  ;;  %1611 = vmatpush2.xpose.msk.msra.mxu1 %vm1145_vm3, %v2172_v49 }
 0x21d   : > { %1274 = vmatprep.subr.mxu0 %v1746_v5  ;;  %1353 = vmatprep.subr.mxu1 %v1746_v5 }
 0x220   : > { %1586 = vmatpush2.xpose.msk.msra.mxu0 %vm1145_vm3, %v2181_v50  ;;  %1612 = vmatpush2.xpose.msk.msra.mxu1 %vm1145_vm3, %v2181_v50 }
 0x221   : > { %1276 = vmatprep.subr.mxu0 %v1746_v5  ;;  %1355 = vmatprep.subr.mxu1 %v1746_v5 }
 0x224   : > { %1587 = vmatpush2.xpose.msk.msra.mxu0 %vm1145_vm3, %v2190_v51  ;;  %1613 = vmatpush2.xpose.msk.msra.mxu1 %vm1145_vm3, %v2190_v51 }
 0x225   : > { %1278 = vmatprep.subr.mxu0 %v1746_v5  ;;  %1357 = vmatprep.subr.mxu1 %v1746_v5 }
 0x228   : > { %1588 = vmatpush2.xpose.msk.msra.mxu0 %vm1145_vm3, %v2199_v52  ;;  %1614 = vmatpush2.xpose.msk.msra.mxu1 %vm1145_vm3, %v2199_v52 }
 0x229   : > { %1280 = vmatprep.subr.mxu0 %v1746_v5  ;;  %1359 = vmatprep.subr.mxu1 %v1746_v5 }
 0x22c   : > { %1589 = vmatpush2.xpose.msk.msra.mxu0 %vm1145_vm3, %v2208_v53  ;;  %1615 = vmatpush2.xpose.msk.msra.mxu1 %vm1145_vm3, %v2208_v53 }
 0x22d   : > { %1282 = vmatprep.subr.mxu0 %v1746_v5  ;;  %1361 = vmatprep.subr.mxu1 %v1746_v5 }
 0x230   : > { %1590 = vmatpush2.xpose.msk.msra.mxu0 %vm1145_vm3, %v2221_v54  ;;  %1616 = vmatpush2.xpose.msk.msra.mxu1 %vm1145_vm3, %v2221_v54 }
 0x231   : > { %1284 = vmatprep.subr.mxu0 %v1746_v5  ;;  %1363 = vmatprep.subr.mxu1 %v1746_v5 }
 0x234   : > { %1591 = vmatpush2.xpose.msk.msra.mxu0 %vm1145_vm3, %v2230_v55  ;;  %1617 = vmatpush2.xpose.msk.msra.mxu1 %vm1145_vm3, %v2230_v55 }
 0x235   : > { %1286 = vmatprep.subr.mxu0 %v1746_v5  ;;  %1365 = vmatprep.subr.mxu1 %v1746_v5 }
 0x238   : > { %1592 = vmatpush2.xpose.msk.msra.mxu0 %vm1145_vm3, %v2235_v56  ;;  %1618 = vmatpush2.xpose.msk.msra.mxu1 %vm1145_vm3, %v2235_v56 }
 0x297   : > { %v892_v6 = vpop.f32.mrf.mxu0  ;;  %v1131_v7 = vpop.f32.mrf.mxu1 }
 0x298   : > { %v1135_v8 = vmax.f32 %v892_v6, %v1131_v7 }
 0x299   : > { %v894_v9 = vpop.f32.mrf.mxu0  ;;  %v1133_v10 = vpop.f32.mrf.mxu1 }
 0x29a   : > { %v1136_v11 = vsub.f32 %v892_v6, %v1135_v8  ;;  %v1139_v12 = vsub.f32 %v1131_v7, %v1135_v8 }
 0x29c   : > { %v1137_v13 = vmul.f32 1.442695, %v1136_v11  ;;  %v1140_v14 = vmul.f32 1.442695, %v1139_v12 }
 0x29e   : > { %1698 = vpow2.f32 %v1137_v13 }
 0x29f   : > { %1700 = vpow2.f32 %v1140_v14 }
 0x2ab   : > { %v1699_v5 = vpop.eup %1698 }
 0x2ac   : > { %v1701_v15 = vpop.eup %1700 }
 0x2ad   : > { %v1142_v16 = vadd.f32 %v1701_v15, %v1699_v5 }
 0x2af   : > { %1702 = vrcp.f32 %v1142_v16 }
 0x2bc   : > { %v1703_v17 = vpop.eup %1702 }
 0x2bd   : > { %v1144_v18 = vmul.f32 %v1703_v17, %v1699_v5  ;;  %v1299_v19 = vmul.f32 %v1703_v17, %v1701_v15 }
 0x2bf   : > { %1593 = vmatmul.mubr.msk.f32.vlgmr.msra.gmra.mxu0 %vm1145_vm3, %v1144_v18  ;;  %1619 = vmatmul.mubr.msk.f32.vlgmr.msra.gmra.mxu1 %vm1145_vm3, %v1299_v19 }
 0x37f   : > { %v1290_v20 = vpop.f32.mrf.mxu0  ;;  %v1369_v21 = vpop.f32.mrf.mxu1 }
 0x380   : > { %v1295_v22 = vmul.f32 %v1290_v20, %v816_v1  ;;  %v1374_v23 = vmul.f32 %v1369_v21, %v1055_v2 }
 0x381   : > { %v1292_v24 = vpop.f32.mrf.mxu0  ;;  %v1371_v25 = vpop.f32.mrf.mxu1 }
 0x382   : > { %v1376_v26 = vadd.f32 %v1374_v23, %v1295_v22  ;;  %v1296_v27 = vmul.f32 %v1292_v24, %v818_v3  ;;  %v1375_v28 = vmul.f32 %v1371_v25, %v1057_v4 }
 0x384   : > { %1378 = vst [vmem:[%s273_s28] sm:$0xff] %v1376_v26  ;;  %v1377_v29 = vadd.f32 %v1375_v28, %v1296_v27 }
 0x386   : > { %1379 = vst.msk [vmem:[%s273_s28 + $0x8] sm:$0xff] %vm433_vm0, %v1377_v29 }
 0x387 PF: > { %s18_s21 = sadd.s32 1, %s1740_s21  }
 0x388   : > { %p15_p1 = scmp.ge.s32.totalorder %s18_s21, 4  }
 0x38a   :  { %17 = sbr.rel (!%p15_p1) target bundleno = 1 (0x1), region = 90 }
 0x38f   :  { %1415 = vsyncpa [#allocation3], 1 }
 0x390   :  { %1417 = vsyncpa [#allocation3 + $0x1], 1 }

// kernel: decoder_layer_forward.3
= control target key start
LH: loop header
LB: loop body
LE: loop exit
PB: predicated region body
PF: predicated region fallthrough
CT: control target
= control target key end

     0   :  { %16 = vsyncpa [#allocation3], 0  ;;  %s2691_s0 = inlined_call_operand.vmem [shape: f32[16,200], index: 0, kind: input, shape index: {}]   ;;  %s2692_s1 = inlined_call_operand.vmem [shape: f32[16,200], index: 1, kind: input, shape index: {}]   ;;  %s2693_s2 = inlined_call_operand.vmem [shape: bf16[200,200], index: 2, kind: input, shape index: {}]   ;;  %s2694_s3 = inlined_call_operand.vmem [shape: bf16[200,400], index: 3, kind: input, shape index: {}]   ;;  %s2695_s4 = inlined_call_operand.vmem [shape: f32[1,400], index: 4, kind: input, shape index: {}]   ;;  %s2696_s5 = inlined_call_operand.vmem [shape: bf16[400,200], index: 5, kind: input, shape index: {}]   ;;  %s2697_s6 = inlined_call_operand.vmem [shape: f32[1,200], index: 6, kind: input, shape index: {}]   ;;  %s2698_s7 = inlined_call_operand.vmem [shape: f32[1,200], index: 7, kind: input, shape index: {}]   ;;  %s2699_s8 = inlined_call_operand.vmem [shape: f32[1,200], index: 8, kind: input, shape index: {}]   ;;  %s2700_s9 = inlined_call_operand.vmem [shape: f32[1,200], index: 9, kind: input, shape index: {}]   ;;  %s2701_s10 = inlined_call_operand.vmem [shape: f32[1,200], index: 10, kind: input, shape index: {}]   ;;  %s2702_s11 = inlined_call_operand.hbm [shape: f32[16,200], index: 11, kind: output, shape index: {}]  }
   0x1   :  { %18 = vsyncpa [#allocation3 + $0x1], 0  ;;  %s2131_s17 = smov 0   ;;  %s2133_s18 = smov 0  }
   0x2   :  { %s2135_s19 = smov 0   ;;  %s2137_s20 = smov 0  }
   0x3 LB: > { %s2152_s21 = sadd.s32 4294967295, %s2068_s20   ;;  %s1624_s22 = sadd.s32 4294967294, %s2068_s20   ;;  %s2068_s20 = sphi %s2137_s20, %s2712_s20   ;;  %s2064_s19 = sphi %s2135_s19, %s2711_s19   ;;  %s2060_s18 = sphi %s2133_s18, %s2710_s18   ;;  %s2056_s17 = sphi %s2131_s17, %s2709_s17  }
   0x4   : > { %s2156_s23 = sadd.s32 1, %s2068_s20   ;;  %s272_s24 = sadd.s32 1, %s2064_s19 }
   0x5   : > { %s269_s25 = ssub.s32 %s2068_s20, %s2156_s23  ;;  %p282_p0 = scmp.ne.s32.totalorder %s2064_s19, %s2060_s18 }
   0x6   : > { %p270_p1 = scmp.eq.s32.totalorder %s269_s25, 0  ;;  %p283_p2 = scmp.eq.s32.totalorder %s2152_s21, 1 }
   0x7   : > { %p288_p3 = scmp.ne.s32.totalorder %s2060_s18, %s2056_s17  ;;  %p289_p4 = scmp.eq.s32.totalorder %s1624_s22, 1 }
   0x8   : > { %s2167_s26 = scalar_select %p270_p1, %s2064_s19, %s272_s24  }
   0x9   : > { %p2169_p5 = por %p283_p2, %p282_p0  ;;  %p2173_p6 = por %p289_p4, %p288_p3 }
   0xa   : > { %2704 = sst [smem:[#allocation5_spill]] %s2167_s26  ;;  %p1627_p7 = scmp.ge.s32.totalorder %s2068_s20, 1 }
   0xb   : > { %p350_p8 = scmp.lt.s32.totalorder %s2068_s20, 3 }
   0xd   : > { %p351_p9 = pnand %p1627_p7, %p350_p8 }
   0xe   : > { %p395_p10 = scmp.lt.s32.totalorder (!%p351_p9), %s2152_s21, 1  ;;  %s1775_s25 = sshll.u32 (!%p351_p9), %s2152_s21, 8 }
   0xf   : > { %354 = sbr.rel (%p351_p9) target bundleno = 1313 (0x521), region = 64 }
  0x14   : > { %v1815_v0 = vld [vmem:[%s2693_s2 + $0x74] ss:$8 sps:$4 sm:$0xff]   ;;  %v1817_v1 = vld [vmem:[%s2693_s2 + $0x70] ss:$8 sps:$4 sm:$0xff]   ;;  %v1818_v2 = vld [vmem:[%s2693_s2 + $0x64] ss:$8 sps:$4 sm:$0xff]  }
  0x15   : > { %573 = vmatprep.subr.bf16.mxu0 %v1815_v0  ;;  %v1820_v3 = vld [vmem:[%s2693_s2 + $0x60] ss:$8 sps:$4 sm:$0xff]   ;;  %v1821_v4 = vld [vmem:[%s2693_s2 + $0x54] ss:$8 sps:$4 sm:$0xff]   ;;  %s2196_s29 = scalar_select %p395_p10, %s2152_s21, 1  ;;  %vm562_vm0 = vcmask 588800  }
  0x16   : > { %574 = vmatpush1.bf16.msra.mxu0 %v1817_v1  ;;  %v1823_v5 = vld [vmem:[%s2693_s2 + $0x50] ss:$8 sps:$4 sm:$0xff]   ;;  %v1824_v6 = vld [vmem:[%s2693_s2 + $0x44] ss:$8 sps:$4 sm:$0xff]   ;;  %v1826_v7 = vld [vmem:[%s2693_s2 + $0x40] ss:$8 sps:$4 sm:$0xff]  }
  0x17   : > { %575 = vmatprep.subr.bf16.mxu0 %v1818_v2  ;;  %s2703_s15 = sshll.u32 %s2196_s29, 4  ;;  %v1827_v8 = vld [vmem:[%s2693_s2 + $0x34] ss:$8 sps:$4 sm:$0xff]   ;;  %v1829_v9 = vld [vmem:[%s2693_s2 + $0x30] ss:$8 sps:$4 sm:$0xff]   ;;  %v434_v17 = vld [vmem:[%s2693_s2 + $0xc0] sm:$0xff] }
  0x18   : > { %s2216_s12 = scalar_lea.vmem %s2691_s0, %s2703_s15  ;;  %v1830_v10 = vld [vmem:[%s2693_s2 + $0x24] ss:$8 sps:$4 sm:$0xff]   ;;  %v1832_v12 = vld [vmem:[%s2693_s2 + $0x20] ss:$8 sps:$4 sm:$0xff]   ;;  %v1833_v14 = vld [vmem:[%s2693_s2 + $0x14] ss:$8 sps:$4 sm:$0xff]   ;;  %v1658_v19 = vcombine.high %v434_v17, %v434_v17  ;;  %v1657_v20 = vcombine.low %v434_v17, %v434_v17 }
  0x19   : > { %v407_v11 = vld [vmem:[%s2216_s12 + $0x8] sm:$0xff]  ;;  %v1835_v15 = vld [vmem:[%s2693_s2 + $0x10] ss:$8 sps:$4 sm:$0xff]   ;;  %vm566_vm1 = vcmask 1043456   ;;  %v1841_v21 = vld [vmem:[%s2693_s2 + $0xb4] ss:$8 sps:$4 sm:$0xff]  }
  0x1a   : > { %576 = vmatpush1.bf16.msra.mxu0 %v1820_v3  ;;  %v409_v13 = vpack.c.bf16 %v407_v11, %v407_v11  ;;  %v1836_v16 = vld [vmem:[%s2693_s2 + $0x4] ss:$8 sps:$4 sm:$0xff]   ;;  %v1838_v18 = vld [vmem:[%s2693_s2] ss:$8 sps:$4 sm:$0xff]   ;;  %v568_v22 = vsel %vm566_vm1, %v1657_v20, 0  ;;  %s2707_s30 = sshll.u32 %s2196_s29, 4  ;;  %s2655_s29 = scalar_lea.hbm %s2702_s11, %s1775_s25 }
  0x1b   : > { %577 = vmatprep.subr.bf16.mxu0 %v1821_v4  ;;  %v1843_v23 = vld [vmem:[%s2693_s2 + $0xb0] ss:$8 sps:$4 sm:$0xff]   ;;  %v1844_v24 = vld [vmem:[%s2693_s2 + $0xa4] ss:$8 sps:$4 sm:$0xff]   ;;  %v1846_v25 = vld [vmem:[%s2693_s2 + $0xa0] ss:$8 sps:$4 sm:$0xff]   ;;  %s404_s14 = scalar_lea.vmem %s2692_s1, %s2707_s30 }
  0x1c   : > { %1660 = vmatprep.mubr.msk.bf16.mxu0 %vm562_vm0, %v409_v13  ;;  %v1847_v26 = vld [vmem:[%s2693_s2 + $0x94] ss:$8 sps:$4 sm:$0xff]   ;;  %v1849_v27 = vld [vmem:[%s2693_s2 + $0x90] ss:$8 sps:$4 sm:$0xff]   ;;  %v1850_v28 = vld [vmem:[%s2693_s2 + $0x84] ss:$8 sps:$4 sm:$0xff]  }
  0x1d   : > { %v1852_v29 = vld [vmem:[%s2693_s2 + $0x80] ss:$8 sps:$4 sm:$0xff]   ;;  %v1853_v42 = vld [vmem:[%s2694_s3 + $0xe4] ss:$16 sps:$4 sm:$0xff]   ;;  %v1857_v44 = vld [vmem:[%s2694_s3 + $0xec] ss:$16 sps:$4 sm:$0xff]  }
  0x1e   : > { %578 = vmatpush1.bf16.msra.mxu0 %v1823_v5  ;;  %v406_v30 = vld [vmem:[%s2216_s12] sm:$0xff]  ;;  %v436_v33 = vld [vmem:[%s404_s14 + $0x8] sm:$0xff]  ;;  %1000 = vmatprep.subr.bf16.mxu1 %v1853_v42  ;;  %v1931_v42 = vld [vmem:[%s2696_s5 + $0x74] ss:$8 sps:$4 sm:$0xff]   ;;  %vm1402_vm2 = vcmask 130048   ;;  %s2070_s21 = smov [#allocation2]  }
  0x1f   : > { %579 = vmatprep.subr.bf16.mxu0 %v1824_v6  ;;  %v408_v31 = vpack.c.bf16 %v406_v30, %v406_v30  ;;  %v435_v34 = vld [vmem:[%s404_s14] sm:$0xff]  ;;  %v1855_v43 = vld [vmem:[%s2694_s3 + $0xe8] ss:$16 sps:$4 sm:$0xff]   ;;  %v1863_v47 = vld [vmem:[%s2694_s3 + $0xcc] ss:$16 sps:$4 sm:$0xff]   ;;  %s392_s14 = sand.u32 1, %s2060_s18  }
  0x20   : > { %v1858_v45 = vld [vmem:[%s2694_s3 + $0xe0] ss:$16 sps:$4 sm:$0xff]   ;;  %v1859_v46 = vld [vmem:[%s2694_s3 + $0xc4] ss:$16 sps:$4 sm:$0xff]   ;;  %v1861_v48 = vld [vmem:[%s2694_s3 + $0xc8] ss:$16 sps:$4 sm:$0xff]  }
  0x21   : > { %1001 = vmatpush1.bf16.msra.mxu1 %v1858_v45  ;;  %v1864_v49 = vld [vmem:[%s2694_s3 + $0xc0] ss:$16 sps:$4 sm:$0xff]   ;;  %v1865_v50 = vld [vmem:[%s2694_s3 + $0xa4] ss:$16 sps:$4 sm:$0xff]   ;;  %v1869_v51 = vld [vmem:[%s2694_s3 + $0xac] ss:$16 sps:$4 sm:$0xff]  }
  0x22   : > { %580 = vmatpush1.bf16.msra.mxu0 %v1826_v7  ;;  %1002 = vmatprep.subr.bf16.mxu1 %v1859_v46  ;;  %v1867_v52 = vld [vmem:[%s2694_s3 + $0xa8] ss:$16 sps:$4 sm:$0xff]   ;;  %v1870_v53 = vld [vmem:[%s2694_s3 + $0xa0] ss:$16 sps:$4 sm:$0xff]   ;;  %v1871_v54 = vld [vmem:[%s2694_s3 + $0x84] ss:$16 sps:$4 sm:$0xff]  }
  0x23   : > { %581 = vmatprep.subr.bf16.mxu0 %v1827_v8  ;;  %v1875_v55 = vld [vmem:[%s2694_s3 + $0x8c] ss:$16 sps:$4 sm:$0xff]   ;;  %v1873_v56 = vld [vmem:[%s2694_s3 + $0x88] ss:$16 sps:$4 sm:$0xff]   ;;  %v1876_v57 = vld [vmem:[%s2694_s3 + $0x80] ss:$16 sps:$4 sm:$0xff]  }
  0x24   : > { %v1877_v58 = vld [vmem:[%s2694_s3 + $0x64] ss:$16 sps:$4 sm:$0xff]   ;;  %v1881_v59 = vld [vmem:[%s2694_s3 + $0x6c] ss:$16 sps:$4 sm:$0xff]   ;;  %v1879_v60 = vld [vmem:[%s2694_s3 + $0x68] ss:$16 sps:$4 sm:$0xff]  }
  0x25   : > { %1003 = vmatpush1.bf16.msra.mxu1 %v1864_v49  ;;  %v1882_v61 = vld [vmem:[%s2694_s3 + $0x60] ss:$16 sps:$4 sm:$0xff]   ;;  %v1883_v62 = vld [vmem:[%s2694_s3 + $0x44] ss:$16 sps:$4 sm:$0xff]   ;;  %v1887_v63 = vld [vmem:[%s2694_s3 + $0x4c] ss:$16 sps:$4 sm:$0xff]  }
  0x26   : > { %582 = vmatpush1.bf16.msra.mxu0 %v1829_v9  ;;  %1004 = vmatprep.subr.bf16.mxu1 %v1865_v50  ;;  %v1885_v0 = vld [vmem:[%s2694_s3 + $0x48] ss:$16 sps:$4 sm:$0xff]   ;;  %v1888_v1 = vld [vmem:[%s2694_s3 + $0x40] ss:$16 sps:$4 sm:$0xff]   ;;  %v1889_v2 = vld [vmem:[%s2694_s3 + $0x24] ss:$16 sps:$4 sm:$0xff]  }
  0x27   : > { %583 = vmatprep.subr.bf16.mxu0 %v1830_v10  ;;  %v1893_v3 = vld [vmem:[%s2694_s3 + $0x2c] ss:$16 sps:$4 sm:$0xff]   ;;  %v1891_v4 = vld [vmem:[%s2694_s3 + $0x28] ss:$16 sps:$4 sm:$0xff]   ;;  %v1894_v13 = vld [vmem:[%s2694_s3 + $0x20] ss:$16 sps:$4 sm:$0xff]  }
  0x28   : > { %v1900_v17 = vld [vmem:[%s2694_s3] ss:$16 sps:$4 sm:$0xff]   ;;  %v1911_v30 = vld [vmem:[%s2694_s3 + $0x144] ss:$16 sps:$4 sm:$0xff]   ;;  %s1628_s12 = sshll.u32 %s392_s14, 4  ;;  %s1539_s16 = scalar_lea.sflag [#allocation3], %s392_s14 }
  0x29   : > { %1005 = vmatpush1.bf16.msra.mxu1 %v1870_v53  ;;  %s394_s26 = scalar_lea.vmem [#allocation2], %s1628_s12  ;;  %s2012_s12 = sshll.u32 %s2070_s21, 4  ;;  %s2013_s12 = int_to_ptr.vmem [resolvable:$false] %s2012_s12 }
  0x2a   : > { %584 = vmatpush1.bf16.msra.mxu0 %v1832_v12  ;;  %1006 = vmatprep.subr.bf16.mxu1 %v1871_v54  ;;  %s1553_s30 = sshll.u32 %s394_s26, 4  ;;  %s2014_s24 = scalar_lea.vmem %s2013_s12, 512  ;;  %s1554_s30 = int_to_ptr.vmem [resolvable:$true] %s1553_s30 }
  0x2b   : > { %585 = vmatprep.subr.bf16.mxu0 %v1833_v14  ;;  %v1895_v14 = vld [vmem:[%s2694_s3 + $0x4] ss:$16 sps:$4 sm:$0xff]   ;;  %s2008_s22 = scalar_lea.vmem %s1554_s30, 256  ;;  %p2015_p0 = scmp.lt.s32.totalorder %s1554_s30, %s2013_s12 }
  0x2c   : > { %p2009_p11 = scmp.ne.s32.totalorder %s1554_s30, %s2008_s22  ;;  %p2016_p1 = scmp.lt.s32.totalorder %s2014_s24, %s2008_s22 }
  0x2d   : > { %1007 = vmatpush1.bf16.msra.mxu1 %v1876_v57 }
  0x2e   : > { %586 = vmatpush1.bf16.msra.mxu0 %v1835_v15  ;;  %1008 = vmatprep.subr.bf16.mxu1 %v1877_v58  ;;  %v1899_v15 = vld [vmem:[%s2694_s3 + $0xc] ss:$16 sps:$4 sm:$0xff]   ;;  %p2010_p12 = pnand %p2009_p11, %p2169_p5  ;;  %p2017_p2 = por %p2016_p1, %p2015_p0 }
  0x2f   : > { %587 = vmatprep.subr.bf16.mxu0 %v1836_v16  ;;  %v1897_v16 = vld [vmem:[%s2694_s3 + $0x8] ss:$16 sps:$4 sm:$0xff]  }
  0x30   : > { %p2011_p13 = pneg %p2010_p12 }
  0x31   : > { %1009 = vmatpush1.bf16.msra.mxu1 %v1882_v61 }
  0x32   : > { %588 = vmatpush1.bf16.msra.mxu0 %v1838_v18  ;;  %1010 = vmatprep.subr.bf16.mxu1 %v1883_v62  ;;  %v711_v18 = vld [vmem:[%s2694_s3 + $0x180] sm:$0xff]  ;;  %p2018_p3 = pnand %p2017_p2, %p2011_p13 }
  0x33   : > { %1659 = vmatprep.subr.msk.bf16.mxu0 %vm566_vm1, %v1658_v19  ;;  %v712_v19 = vld [vmem:[%s2694_s3 + $0x188] sm:$0xff]  ;;  %v1710_v20 = vcombine.high %v711_v18, %v711_v18 }
  0x35   : > { %1011 = vmatpush1.bf16.msra.mxu1 %v1888_v1 }
  0x36   : > { %596 = vmatpush2.bf16.msra.mxu0 %v568_v22  ;;  %1012 = vmatprep.subr.bf16.mxu1 %v1889_v2  ;;  %v1709_v22 = vcombine.low %v711_v18, %v711_v18  ;;  %v1929_v2 = vld [vmem:[%s2696_s5 + $0x70] ss:$8 sps:$4 sm:$0xff]  }
  0x37   : > { %597 = vmatprep.subr.bf16.mxu0 %v1841_v21  ;;  %v1712_v21 = vcombine.high %v712_v19, %v712_v19  ;;  %v1941_v18 = vld [vmem:[%s2696_s5 + $0x30] ss:$8 sps:$4 sm:$0xff]  }
  0x39   : > { %1013 = vmatpush1.bf16.msra.mxu1 %v1894_v13  ;;  %v1973_v13 = vld [vmem:[%s2696_s5 + $0x144] ss:$8 sps:$4 sm:$0xff]  }
  0x3a   : > { %598 = vmatpush2.bf16.msra.mxu0 %v1843_v23  ;;  %1014 = vmatprep.subr.bf16.mxu1 %v1895_v14  ;;  %v1711_v23 = vcombine.low %v712_v19, %v712_v19  ;;  %v1938_v14 = vld [vmem:[%s2696_s5 + $0x40] ss:$8 sps:$4 sm:$0xff]   ;;  %v1977_v19 = vld [vmem:[%s2696_s5 + $0x130] ss:$8 sps:$4 sm:$0xff]  }
  0x3b   : > { %599 = vmatprep.subr.bf16.mxu0 %v1844_v24  ;;  %v1905_v24 = vld [vmem:[%s2694_s3 + $0x164] ss:$16 sps:$4 sm:$0xff]  }
  0x3d   : > { %1015 = vmatpush1.bf16.msra.mxu1 %v1900_v17  ;;  %v1979_v17 = vld [vmem:[%s2696_s5 + $0x134] ss:$8 sps:$4 sm:$0xff]  }
  0x3e   : > { %600 = vmatpush2.bf16.msra.mxu0 %v1846_v25  ;;  %v1909_v25 = vld [vmem:[%s2694_s3 + $0x16c] ss:$16 sps:$4 sm:$0xff]   ;;  %1713 = vmatprep.subr.msk.bf16.mxu1 %vm566_vm1, %v1710_v20 }
  0x3f   : > { %601 = vmatprep.subr.bf16.mxu0 %v1847_v26  ;;  %v989_v26 = vsel %vm566_vm1, %v1709_v22, 0  ;;  %v1946_v20 = vld [vmem:[%s2696_s5 + $0x24] ss:$8 sps:$4 sm:$0xff]   ;;  %v1944_v22 = vld [vmem:[%s2696_s5 + $0x20] ss:$8 sps:$4 sm:$0xff]  }
  0x41   : > { %1023 = vmatpush2.bf16.msra.mxu1 %v989_v26  ;;  %v1947_v26 = vld [vmem:[%s2696_s5 + $0x10] ss:$8 sps:$4 sm:$0xff]  }
  0x42   : > { %602 = vmatpush2.bf16.msra.mxu0 %v1849_v27  ;;  %v995_v27 = vsel %vm566_vm1, %v1711_v23, 0  ;;  %1024 = vmatprep.subr.bf16.mxu1 %v1905_v24  ;;  %v1983_v23 = vld [vmem:[%s2696_s5 + $0x120] ss:$8 sps:$4 sm:$0xff]   ;;  %v1949_v24 = vld [vmem:[%s2696_s5 + $0x14] ss:$8 sps:$4 sm:$0xff]  }
  0x43   : > { %603 = vmatprep.subr.bf16.mxu0 %v1850_v28  ;;  %v1907_v28 = vld [vmem:[%s2694_s3 + $0x168] ss:$16 sps:$4 sm:$0xff]  }
  0x46   : > { %604 = vmatpush2.bf16.msra.mxu0 %v1852_v29  ;;  %v1910_v29 = vld [vmem:[%s2694_s3 + $0x160] ss:$16 sps:$4 sm:$0xff]  }
  0x47   : > { %1041 = vmatprep.subr.bf16.mxu0 %v1857_v44  ;;  %1025 = vmatpush2.bf16.msra.mxu1 %v1910_v29  ;;  %v1950_v29 = vld [vmem:[%s2696_s5] ss:$8 sps:$4 sm:$0xff]  }
  0x48   : > { %1026 = vmatprep.subr.bf16.mxu1 %v1911_v30  ;;  %v1958_v30 = vld [vmem:[%s2696_s5 + $0xf4] ss:$8 sps:$4 sm:$0xff]  }
  0x49   : > { %606 = vmatmul.mubr.bf16.vlgmr.msra.gmra.mxu0 %v408_v31  ;;  %v1915_v31 = vld [vmem:[%s2694_s3 + $0x14c] ss:$16 sps:$4 sm:$0xff]  }
  0x4a   : > { %1042 = vmatpush1.bf16.msra.mxu0 %v1855_v43  ;;  %v1955_v43 = vld [vmem:[%s2696_s5 + $0x174] ss:$8 sps:$4 sm:$0xff]  }
  0x4b   : > { %1043 = vmatprep.subr.bf16.mxu0 %v1863_v47  ;;  %v635_v47 = vlaneseq }
  0x4e   : > { %1044 = vmatpush1.bf16.msra.mxu0 %v1861_v48  ;;  %v2450_v48 = vshrl.u32 %v635_v47, 7  ;;  %v2003_v47 = vld [vmem:[%s2696_s5 + $0x184] ss:$8 sps:$4 sm:$0xff]  }
  0x4f   : > { %1045 = vmatprep.subr.bf16.mxu0 %v1869_v51  ;;  %v633_v51 = vld [vmem:[%s2698_s7] sm:$0x3] }
  0x50   : > { %v2453_v49 = vsub.s32 0, %v2450_v48  ;;  %v2456_v50 = vsub.s32 1, %v2450_v48 }
  0x52   : > { %1046 = vmatpush1.bf16.msra.mxu0 %v1867_v52  ;;  %v647_v52 = vld [vmem:[%s2699_s8] sm:$0x3]  ;;  %v638_v53 = vrot.slane %v633_v51, %v2453_v49  ;;  %v642_v54 = vrot.slane %v633_v51, %v2456_v50 }
  0x53   : > { %1047 = vmatprep.subr.bf16.mxu0 %v1875_v55  ;;  %v652_v57 = vrot.slane %v647_v52, %v2453_v49  ;;  %v656_v58 = vrot.slane %v647_v52, %v2456_v50  ;;  %v1998_v51 = vld [vmem:[%s2696_s5 + $0x80] ss:$8 sps:$4 sm:$0xff]  }
  0x54   : > { %v2001_v52 = vld [vmem:[%s2696_s5 + $0x180] ss:$8 sps:$4 sm:$0xff]  }
  0x56   : > { %1048 = vmatpush1.bf16.msra.mxu0 %v1873_v56 }
  0x57   : > { %1049 = vmatprep.subr.bf16.mxu0 %v1881_v59 }
  0x5a   : > { %1050 = vmatpush1.bf16.msra.mxu0 %v1879_v60 }
  0x5b   : > { %1051 = vmatprep.subr.bf16.mxu0 %v1887_v63 }
  0x5e   : > { %1052 = vmatpush1.bf16.msra.mxu0 %v1885_v0 }
  0x5f   : > { %1053 = vmatprep.subr.bf16.mxu0 %v1893_v3  ;;  %v1953_v3 = vld [vmem:[%s2696_s5 + $0x170] ss:$8 sps:$4 sm:$0xff]  }
  0x62   : > { %1054 = vmatpush1.bf16.msra.mxu0 %v1891_v4  ;;  %v1934_v4 = vld [vmem:[%s2696_s5 + $0x64] ss:$8 sps:$4 sm:$0xff]  }
  0x63   : > { %1055 = vmatprep.subr.bf16.mxu0 %v1899_v15  ;;  %v1971_v15 = vld [vmem:[%s2696_s5 + $0x140] ss:$8 sps:$4 sm:$0xff]  }
  0x66   : > { %1056 = vmatpush1.bf16.msra.mxu0 %v1897_v16  ;;  %v1943_v16 = vld [vmem:[%s2696_s5 + $0x34] ss:$8 sps:$4 sm:$0xff]  }
  0x67   : > { %1715 = vmatprep.subr.msk.bf16.mxu0 %vm566_vm1, %v1712_v21  ;;  %v1985_v21 = vld [vmem:[%s2696_s5 + $0x124] ss:$8 sps:$4 sm:$0xff]  }
  0x6a   : > { %1064 = vmatpush2.bf16.msra.mxu0 %v995_v27  ;;  %v1989_v27 = vld [vmem:[%s2696_s5 + $0x110] ss:$8 sps:$4 sm:$0xff]  }
  0x6b   : > { %1065 = vmatprep.subr.bf16.mxu0 %v1909_v25  ;;  %v1991_v25 = vld [vmem:[%s2696_s5 + $0x114] ss:$8 sps:$4 sm:$0xff]  }
  0x6e   : > { %1066 = vmatpush2.bf16.msra.mxu0 %v1907_v28  ;;  %v1952_v28 = vld [vmem:[%s2696_s5 + $0x4] ss:$8 sps:$4 sm:$0xff]  }
  0x6f   : > { %1067 = vmatprep.subr.bf16.mxu0 %v1915_v31  ;;  %v1956_v31 = vld [vmem:[%s2696_s5 + $0xf0] ss:$8 sps:$4 sm:$0xff]  }
 0x109   : > { %v607_v32 = vpop.f32.mrf.mxu0 }
 0x10a   : > { %v608_v37 = vadd.f32 %v607_v32, %v435_v34  ;;  %v1913_v32 = vld [vmem:[%s2694_s3 + $0x148] ss:$16 sps:$4 sm:$0xff]   ;;  %v1917_v34 = vld [vmem:[%s2694_s3 + $0x124] ss:$16 sps:$4 sm:$0xff]  }
 0x10b   : > { %v609_v35 = vpop.f32.mrf.mxu0  ;;  %1068 = vmatpush2.bf16.msra.mxu0 %v1913_v32  ;;  %v1964_v32 = vld [vmem:[%s2696_s5 + $0xe4] ss:$8 sps:$4 sm:$0xff]  }
 0x10c   : > { %v2276_v36 = vadd.f32 %v609_v35, %v436_v33  ;;  %v1916_v33 = vld [vmem:[%s2694_s3 + $0x140] ss:$16 sps:$4 sm:$0xff]   ;;  %v1921_v35 = vld [vmem:[%s2694_s3 + $0x12c] ss:$16 sps:$4 sm:$0xff]  }
 0x10d   : > { %v611_v38 = vpop.f32.mrf.mxu0  ;;  %1027 = vmatpush2.bf16.msra.mxu1 %v1916_v33  ;;  %1069 = vmatprep.subr.bf16.mxu0 %v1921_v35  ;;  %v1962_v33 = vld [vmem:[%s2696_s5 + $0xe0] ss:$8 sps:$4 sm:$0xff]   ;;  %v1968_v35 = vld [vmem:[%s2696_s5 + $0xd0] ss:$8 sps:$4 sm:$0xff]  }
 0x10e   : > { %v614_v39 = vsel %vm562_vm0, %v2276_v36, 0.0  ;;  %1028 = vmatprep.subr.bf16.mxu1 %v1917_v34  ;;  %v1923_v38 = vld [vmem:[%s2694_s3 + $0x104] ss:$16 sps:$4 sm:$0xff]  }
 0x10f   : > { %v612_v40 = vpop.f32.mrf.mxu0  ;;  %v615_v41 = vadd.f32 %v614_v39, %v608_v37  ;;  %v1927_v39 = vld [vmem:[%s2694_s3 + $0x10c] ss:$16 sps:$4 sm:$0xff]  }
 0x110   : > { %v1925_v40 = vld [vmem:[%s2694_s3 + $0x108] ss:$16 sps:$4 sm:$0xff]   ;;  %v1970_v34 = vld [vmem:[%s2696_s5 + $0xd4] ss:$8 sps:$4 sm:$0xff]  }
 0x111   : > { %616 = vadd.xlane.f32.xlu0 %v615_v41  ;;  %v1928_v41 = vld [vmem:[%s2694_s3 + $0x100] ss:$16 sps:$4 sm:$0xff]  }
 0x19a   : > { %v617_v5 = vpop.xlane.xlu0 %616 }
 0x19b   : > { %v619_v6 = vmul.f32 0.005, %v617_v5  ;;  %v1961_v5 = vld [vmem:[%s2696_s5 + $0x164] ss:$8 sps:$4 sm:$0xff]  }
 0x19d   : > { %v2361_v7 = vsub.f32 %v608_v37, %v619_v6  ;;  %v2364_v8 = vsub.f32 %v2276_v36, %v619_v6  ;;  %v1919_v36 = vld [vmem:[%s2694_s3 + $0x128] ss:$16 sps:$4 sm:$0xff]   ;;  %v1922_v37 = vld [vmem:[%s2694_s3 + $0x120] ss:$16 sps:$4 sm:$0xff]  }
 0x19e   : > { %1029 = vmatpush2.bf16.msra.mxu1 %v1922_v37  ;;  %1070 = vmatpush2.bf16.msra.mxu0 %v1919_v36  ;;  %v1932_v6 = vld [vmem:[%s2696_s5 + $0x60] ss:$8 sps:$4 sm:$0xff]   ;;  %v1976_v36 = vld [vmem:[%s2696_s5 + $0xc4] ss:$8 sps:$4 sm:$0xff]  }
 0x19f   : > { %v622_v9 = vmul.f32 %v2361_v7, %v2361_v7  ;;  %v623_v10 = vmul.f32 %v2364_v8, %v2364_v8  ;;  %1030 = vmatprep.subr.bf16.mxu1 %v1923_v38  ;;  %1071 = vmatprep.subr.bf16.mxu0 %v1927_v39  ;;  %v1974_v37 = vld [vmem:[%s2696_s5 + $0xc0] ss:$8 sps:$4 sm:$0xff]   ;;  %v1982_v38 = vld [vmem:[%s2696_s5 + $0xb4] ss:$8 sps:$4 sm:$0xff]   ;;  %v1980_v39 = vld [vmem:[%s2696_s5 + $0xb0] ss:$8 sps:$4 sm:$0xff]  }
 0x1a1   : > { %v624_v11 = vsel %vm562_vm0, %v623_v10, 0.0  ;;  %v1935_v10 = vld [vmem:[%s2696_s5 + $0x50] ss:$8 sps:$4 sm:$0xff]  }
 0x1a2   : > { %v625_v12 = vadd.f32 %v624_v11, %v622_v9  ;;  %1031 = vmatpush2.bf16.msra.mxu1 %v1928_v41  ;;  %1072 = vmatpush2.bf16.msra.mxu0 %v1925_v40  ;;  %v1967_v9 = vld [vmem:[%s2696_s5 + $0x154] ss:$8 sps:$4 sm:$0xff]   ;;  %v1965_v11 = vld [vmem:[%s2696_s5 + $0x150] ss:$8 sps:$4 sm:$0xff]   ;;  %v1988_v40 = vld [vmem:[%s2696_s5 + $0xa4] ss:$8 sps:$4 sm:$0xff]  }
 0x1a3   : > { %1406 = vmatprep.subr.bf16.mxu1 %v1931_v42  ;;  %1447 = vmatprep.subr.bf16.mxu0 %v1955_v43  ;;  %v1986_v41 = vld [vmem:[%s2696_s5 + $0xa0] ss:$8 sps:$4 sm:$0xff]   ;;  %v1994_v42 = vld [vmem:[%s2696_s5 + $0x94] ss:$8 sps:$4 sm:$0xff]   ;;  %v1997_v43 = vld [vmem:[%s2696_s5 + $0x104] ss:$8 sps:$4 sm:$0xff]  }
 0x1a4   : > { %626 = vadd.xlane.f32.xlu0 %v625_v12  ;;  %v1940_v12 = vld [vmem:[%s2696_s5 + $0x44] ss:$8 sps:$4 sm:$0xff]  }
 0x22d   : > { %v627_v44 = vpop.xlane.xlu0 %626 }
 0x22e   : > { %v628_v45 = vmul.f32 0.005, %v627_v44  ;;  %v1992_v44 = vld [vmem:[%s2696_s5 + $0x90] ss:$8 sps:$4 sm:$0xff]  }
 0x230   : > { %v629_v46 = vadd.f32 1e-05, %v628_v45  ;;  %v1995_v45 = vld [vmem:[%s2696_s5 + $0x100] ss:$8 sps:$4 sm:$0xff]  }
 0x232   : > { %2004 = vrsqrt.f32 %v629_v46  ;;  %v2000_v46 = vld [vmem:[%s2696_s5 + $0x84] ss:$8 sps:$4 sm:$0xff]  }
 0x23f   : > { %v2005_v55 = vpop.eup %2004 }
 0x240   : > { %v632_v56 = vmul.f32 %v2005_v55, %v2364_v8  ;;  %v631_v59 = vmul.f32 %v2005_v55, %v2361_v7  ;;  %v1959_v7 = vld [vmem:[%s2696_s5 + $0x160] ss:$8 sps:$4 sm:$0xff]   ;;  %v1937_v8 = vld [vmem:[%s2696_s5 + $0x54] ss:$8 sps:$4 sm:$0xff]   ;;  %v729_v55 = vsub.s32 3, %v2450_v48 }
 0x242   : > { %v646_v60 = vmul.f32 %v642_v54, %v632_v56  ;;  %v645_v61 = vmul.f32 %v638_v53, %v631_v59  ;;  %v725_v53 = vsub.s32 2, %v2450_v48  ;;  %v713_v54 = vld [vmem:[%s2695_s4] sm:$0xf] }
 0x243   : > { %v718_v56 = vrot.slane %v713_v54, %v2453_v49  ;;  %v730_v59 = vrot.slane %v713_v54, %v729_v55 }
 0x244   : > { %v2470_v62 = vadd.f32 %v656_v58, %v646_v60  ;;  %v2472_v63 = vadd.f32 %v652_v57, %v645_v61  ;;  %v726_v57 = vrot.slane %v713_v54, %v725_v53  ;;  %v722_v58 = vrot.slane %v713_v54, %v2456_v50 }
 0x246   : > { %v662_v0 = vpack.c.bf16 %v2470_v62, %v2470_v62  ;;  %v661_v1 = vpack.c.bf16 %v2472_v63, %v2472_v63 }
 0x248   : > { %1714 = vmatprep.mubr.msk.bf16.mxu1 %vm562_vm0, %v662_v0  ;;  %1716 = vmatprep.mubr.msk.bf16.mxu0 %vm562_vm0, %v662_v0 }
 0x249   : > { %1033 = vmatmul.mubr.bf16.vlgmr.msra.gmra.mxu1 %v661_v1  ;;  %1074 = vmatmul.mubr.bf16.vlgmr.msra.gmra.mxu0 %v661_v1 }
 0x24a   : > { %1407 = vmatpush1.bf16.msra.mxu1 %v1929_v2  ;;  %1448 = vmatpush1.bf16.msra.mxu0 %v1953_v3 }
 0x24b   : > { %1408 = vmatprep.subr.bf16.mxu1 %v1934_v4  ;;  %1449 = vmatprep.subr.bf16.mxu0 %v1961_v5 }
 0x24e   : > { %1409 = vmatpush1.bf16.msra.mxu1 %v1932_v6  ;;  %1450 = vmatpush1.bf16.msra.mxu0 %v1959_v7 }
 0x24f   : > { %1410 = vmatprep.subr.bf16.mxu1 %v1937_v8  ;;  %1451 = vmatprep.subr.bf16.mxu0 %v1967_v9 }
 0x252   : > { %1411 = vmatpush1.bf16.msra.mxu1 %v1935_v10  ;;  %1452 = vmatpush1.bf16.msra.mxu0 %v1965_v11 }
 0x253   : > { %1412 = vmatprep.subr.bf16.mxu1 %v1940_v12  ;;  %1453 = vmatprep.subr.bf16.mxu0 %v1973_v13 }
 0x256   : > { %1413 = vmatpush1.bf16.msra.mxu1 %v1938_v14  ;;  %1454 = vmatpush1.bf16.msra.mxu0 %v1971_v15 }
 0x257   : > { %1414 = vmatprep.subr.bf16.mxu1 %v1943_v16  ;;  %1455 = vmatprep.subr.bf16.mxu0 %v1979_v17  ;;  %v1140_v17 = vld [vmem:[%s2697_s6] sm:$0x3] }
 0x25a   : > { %1415 = vmatpush1.bf16.msra.mxu1 %v1941_v18  ;;  %1456 = vmatpush1.bf16.msra.mxu0 %v1977_v19  ;;  %v1145_v18 = vrot.slane %v1140_v17, %v2453_v49  ;;  %v1149_v19 = vrot.slane %v1140_v17, %v2456_v50 }
 0x25b   : > { %1416 = vmatprep.subr.bf16.mxu1 %v1946_v20  ;;  %1457 = vmatprep.subr.bf16.mxu0 %v1985_v21 }
 0x25e   : > { %1417 = vmatpush1.bf16.msra.mxu1 %v1944_v22  ;;  %1458 = vmatpush1.bf16.msra.mxu0 %v1983_v23 }
 0x25f   : > { %1418 = vmatprep.subr.bf16.mxu1 %v1949_v24  ;;  %1459 = vmatprep.subr.bf16.mxu0 %v1991_v25 }
 0x262   : > { %1419 = vmatpush1.bf16.msra.mxu1 %v1947_v26  ;;  %1460 = vmatpush1.bf16.msra.mxu0 %v1989_v27 }
 0x263   : > { %1420 = vmatprep.subr.bf16.mxu1 %v1952_v28  ;;  %1461 = vmatprep.subr.bf16.mxu0 %v1997_v43 }
 0x266   : > { %1421 = vmatpush1.bf16.msra.mxu1 %v1950_v29  ;;  %1462 = vmatpush1.bf16.msra.mxu0 %v1995_v45 }
 0x267   : > { %1422 = vmatprep.subr.bf16.mxu1 %v1958_v30  ;;  %1477 = vmatprep.subr.bf16.mxu0 %v2003_v47 }
 0x26a   : > { %1423 = vmatpush2.bf16.msra.mxu1 %v1956_v31  ;;  %1478 = vmatpush2.bf16.msra.mxu0 %v2001_v52 }
 0x26b   : > { %1424 = vmatprep.subr.bf16.mxu1 %v1964_v32 }
 0x26e   : > { %1425 = vmatpush2.bf16.msra.mxu1 %v1962_v33 }
 0x26f   : > { %1426 = vmatprep.subr.bf16.mxu1 %v1970_v34 }
 0x272   : > { %1427 = vmatpush2.bf16.msra.mxu1 %v1968_v35 }
 0x273   : > { %1428 = vmatprep.subr.bf16.mxu1 %v1976_v36 }
 0x276   : > { %1429 = vmatpush2.bf16.msra.mxu1 %v1974_v37 }
 0x277   : > { %1430 = vmatprep.subr.bf16.mxu1 %v1982_v38 }
 0x27a   : > { %1431 = vmatpush2.bf16.msra.mxu1 %v1980_v39 }
 0x27b   : > { %1432 = vmatprep.subr.bf16.mxu1 %v1988_v40 }
 0x27e   : > { %1433 = vmatpush2.bf16.msra.mxu1 %v1986_v41 }
 0x27f   : > { %1434 = vmatprep.subr.bf16.mxu1 %v1994_v42 }
 0x282   : > { %1435 = vmatpush2.bf16.msra.mxu1 %v1992_v44 }
 0x283   : > { %1436 = vmatprep.subr.bf16.mxu1 %v2000_v46  ;;  %v1522_v46 = vld [vmem:[%s2701_s10] sm:$0x3] }
 0x284   : > { %v1527_v55 = vrot.slane %v1522_v46, %v2453_v49 }
 0x286   : > { %1437 = vmatpush2.bf16.msra.mxu1 %v1998_v51 }
 0x309   : > { %v1034_v60 = vpop.f32.mrf.mxu1  ;;  %v1075_v61 = vpop.f32.mrf.mxu0 }
 0x30a   : > { %v1035_v0 = vadd.f32 %v1034_v60, %v718_v56  ;;  %v1076_v1 = vadd.f32 %v1075_v61, %v726_v57  ;;  %v1531_v56 = vrot.slane %v1522_v46, %v2456_v50 }
 0x30b   : > { %v1036_v2 = vpop.f32.mrf.mxu1  ;;  %v1077_v3 = vpop.f32.mrf.mxu0 }
 0x30c   : > { %v1037_v4 = vadd.f32 %v1036_v2, %v722_v58  ;;  %v1078_v5 = vadd.f32 %v1077_v3, %v730_v59  ;;  %v1082_v6 = vmax.f32 %v1035_v0, 0.0  ;;  %v1084_v7 = vmax.f32 %v1076_v1, 0.0 }
 0x30d   : > { %v1038_v8 = vpop.f32.mrf.mxu1  ;;  %v1079_v9 = vpop.f32.mrf.mxu0 }
 0x30e   : > { %v1083_v10 = vmax.f32 %v1037_v4, 0.0  ;;  %v1085_v48 = vmax.f32 %v1078_v5, 0.0  ;;  %v1086_v15 = vpack.c.bf16 %v1082_v6, %v1082_v6  ;;  %v1088_v16 = vpack.c.bf16 %v1084_v7, %v1084_v7 }
 0x30f   : > { %v1039_v11 = vpop.f32.mrf.mxu1  ;;  %v1080_v12 = vpop.f32.mrf.mxu0 }
 0x310   : > { %v1087_v13 = vpack.c.bf16 %v1083_v10, %v1083_v10  ;;  %v1089_v14 = vpack.c.bf16 %v1085_v48, %v1085_v48 }
 0x312   : > { %1438 = vmatprep.mubr.bf16.mxu1 %v1087_v13  ;;  %1767 = vmatprep.mubr.msk.bf16.mxu0 %vm1402_vm2, %v1089_v14 }
 0x313   : > { %1439 = vmatmul.mubr.bf16.vlgmr.msra.gmra.mxu1 %v1086_v15  ;;  %1480 = vmatmul.mubr.bf16.vlgmr.msra.gmra.mxu0 %v1088_v16 }
 0x3d3   : > { %v1440_v20 = vpop.f32.mrf.mxu1  ;;  %v1481_v21 = vpop.f32.mrf.mxu0 }
 0x3d4   : > { %v1441_v22 = vadd.f32 %v1440_v20, %v1145_v18 }
 0x3d5   : > { %v1442_v23 = vpop.f32.mrf.mxu1  ;;  %v1483_v24 = vpop.f32.mrf.mxu0 }
 0x3d6   : > { %v1443_v25 = vadd.f32 %v1442_v23, %v1149_v19  ;;  %v1482_v26 = vadd.f32 %v1481_v21, %v1441_v22 }
 0x3d7   : > { %v1444_v27 = vpop.f32.mrf.mxu1  ;;  %v1485_v28 = vpop.f32.mrf.mxu0 }
 0x3d8   : > { %v1484_v29 = vadd.f32 %v1483_v24, %v1443_v25  ;;  %v1488_v33 = vadd.f32 %v1482_v26, %v2472_v63  ;;  %v1508_v63 = vld [vmem:[%s2700_s9] sm:$0x3] }
 0x3d9   : > { %v1445_v30 = vpop.f32.mrf.mxu1  ;;  %v1486_v31 = vpop.f32.mrf.mxu0  ;;  %v1513_v47 = vrot.slane %v1508_v63, %v2453_v49  ;;  %v1517_v51 = vrot.slane %v1508_v63, %v2456_v50 }
 0x3da   : > { %v1489_v32 = vadd.f32 %v1484_v29, %v2470_v62 }
 0x3dc   : > { %v1490_v34 = vsel %vm562_vm0, %v1489_v32, 0.0 }
 0x3dd   : > { %v1491_v35 = vadd.f32 %v1490_v34, %v1488_v33 }
 0x3df   : > { %1492 = vadd.xlane.f32.xlu1 %v1491_v35 }
 0x468   : > { %v1493_v36 = vpop.xlane.xlu1 %1492 }
 0x469   : > { %v1494_v37 = vmul.f32 0.005, %v1493_v36 }
 0x46b   : > { %v1495_v38 = vsub.f32 %v1488_v33, %v1494_v37  ;;  %v1496_v39 = vsub.f32 %v1489_v32, %v1494_v37 }
 0x46d   : > { %v1497_v40 = vmul.f32 %v1495_v38, %v1495_v38  ;;  %v1498_v41 = vmul.f32 %v1496_v39, %v1496_v39 }
 0x46f   : > { %v1499_v42 = vsel %vm562_vm0, %v1498_v41, 0.0 }
 0x470   : > { %v1500_v43 = vadd.f32 %v1499_v42, %v1497_v40 }
 0x472   : > { %1501 = vadd.xlane.f32.xlu1 %v1500_v43 }
 0x4fb   : > { %v1502_v44 = vpop.xlane.xlu1 %1501 }
 0x4fc   : > { %v1503_v62 = vmul.f32 0.005, %v1502_v44 }
 0x4fe   : > { %v1504_v45 = vadd.f32 1e-05, %v1503_v62 }
 0x500   : > { %2006 = vrsqrt.f32 %v1504_v45 }
 0x50d   : > { %v2007_v52 = vpop.eup %2006 }
 0x50e   : > { %v1506_v53 = vmul.f32 %v2007_v52, %v1495_v38  ;;  %v1507_v54 = vmul.f32 %v2007_v52, %v1496_v39 }
 0x510   : > { %v1520_v57 = vmul.f32 %v1513_v47, %v1506_v53  ;;  %v1521_v58 = vmul.f32 %v1517_v51, %v1507_v54 }
 0x512   : > { %v1534_v59 = vadd.f32 %v1527_v55, %v1520_v57  ;;  %v1535_v60 = vadd.f32 %v1531_v56, %v1521_v58 }
 0x514   : > { %1536 = vst [vmem:[%s394_s26] sm:$0xff] %v1534_v59  ;;  %1537 = vst.msk [vmem:[%s394_s26 + $0x8] sm:$0xff] %vm562_vm0, %v1535_v60 }
 0x515   : > { %2021 = shalt.err (!%p2018_p3)
}
 0x516   : > { %s2022_s25 = scalar_lea.hbm %s2655_s29, 256  ;;  %s2026_s13 = scalar_lea.hbm %s2702_s11, 512 }
 0x517   : > { %p2023_p4 = scmp.ne.s32.totalorder %s2655_s29, %s2022_s25  ;;  %p2027_p9 = scmp.lt.s32.totalorder %s2655_s29, %s2702_s11 }
 0x518   : > { %p2028_p10 = scmp.lt.s32.totalorder %s2026_s13, %s2022_s25 }
 0x519   : > { %p2024_p7 = pnand %p2023_p4, %p2169_p5 }
 0x51a   : > { %p2029_p11 = por %p2028_p10, %p2027_p9 }
 0x51b   : > { %p2025_p8 = pneg %p2024_p7 }
 0x51d   : > { %p2030_p12 = pnand %p2029_p11, %p2025_p8 }
 0x51f   : > { %2033 = shalt.err (!%p2030_p12)
}
 0x520   : > { %1776 = dma.vmem_to_hbm [thread:$0]  (%p2169_p5), %s1554_s30, 256, %s2655_s29, %s1539_s16  }
 0x521 PF: > { %p1782_p13 = scmp.ge.s32.totalorder %s2068_s20, 2  ;;  %s1565_s22 = sand.u32 1, %s2056_s17  }
 0x522   : > { %s1566_s12 = scalar_lea.sflag [#allocation3], %s1565_s22 }
 0x523   : > { %p1779_p0 = pnand %p1782_p13, %p2173_p6 }
 0x525   : > { %p1780_p1 = pneg %p1779_p0 }
 0x527   : > { %2051 = dma.done.wait (%p1780_p1), %s1566_s12, 256  }
 0x528   : > { %2053 = vsyncadd (%p1780_p1), %s1566_s12, 4294967040  ;;  %s2708_s24 = sld [smem:[#allocation5_spill]]  ;;  %p21_p2 = scmp.ge.s32.totalorder %s2156_s23, 4  }
 0x529   : > { %s2709_s17 = smov %s2060_s18  ;;  %s2710_s18 = smov %s2064_s19 }
 0x52a   : > { %s2712_s20 = smov %s2156_s23  ;;  %23 = sbr.rel (!%p21_p2) target bundleno = 3 (0x3), region = 102 }
 0x52e   : > { %s2711_s19 = smov %s2708_s24 }
 0x52f   :  { %1571 = vsyncpa [#allocation3], 1 }
 0x530   :  { %1573 = vsyncpa [#allocation3 + $0x1], 1 }

</bundles_post_ra>
